<compile_context>
chip_gen: v7x
topology: tpu7x:2x2x1
jax: 0.10.0
libtpu: 0.0.40
codegen_flags: <defaults>
</compile_context>

<pallas_src>
import jax
import jax.numpy as jnp
from jax import lax
from jax.experimental import pallas as pl
from jax.experimental.pallas import tpu as pltpu


def mlp_kernel(x_ref,
               w1_ref, b1_ref,
               w2_ref, b2_ref,
               w3_ref, b3_ref,
               w4_ref, b4_ref,
               w5_ref, b5_ref,
               o_ref):
    """Fused 5-layer MLP; activations computed transposed as (features, TB)."""
    # In-kernel bf16 cast of the natural-layout (TB, in) tile (VPU slot is free
    # under an MXU-bound kernel), then an NT contraction so no transposed copy
    # of x is ever materialized: (512, in) . (TB, in)^T -> (512, TB), f32 acc.
    x = x_ref[...].astype(jnp.bfloat16)
    h = lax.dot_general(w1_ref[...], x,
                        dimension_numbers=(((1,), (1,)), ((), ())),
                        preferred_element_type=jnp.float32)
    # Fused bias + ReLU + bf16-cast epilogue: one VMEM pass per intermediate.
    h = jnp.maximum(h + b1_ref[...], 0.0).astype(jnp.bfloat16)

    # Layer 2: (256, 512) @ (512, TB)
    h = jnp.dot(w2_ref[...], h, preferred_element_type=jnp.float32)
    h = jnp.maximum(h + b2_ref[...], 0.0).astype(jnp.bfloat16)

    # Layer 3: (128, 256) @ (256, TB)
    h = jnp.dot(w3_ref[...], h, preferred_element_type=jnp.float32)
    h = jnp.maximum(h + b3_ref[...], 0.0).astype(jnp.bfloat16)

    # Layer 4: (64, 128) @ (128, TB) -> stays f32 (feeds the VPU final layer)
    h = jnp.dot(w4_ref[...], h, preferred_element_type=jnp.float32)
    h = jnp.maximum(h + b4_ref[...], 0.0)              # (64, TB) f32

    # Layer 5 (64 -> 1): VPU multiply + sublane (XLU) reduction instead of a
    # degenerate N=1 MXU matmul. Output row is lane-dense (1, TB).
    w5 = w5_ref[...].astype(jnp.float32)                # (64, 1)
    o = jnp.sum(h * w5, axis=0, keepdims=True)          # (1, TB)
    o_ref[...] = (o + b5_ref[...]).astype(o_ref.dtype)


_TB_TARGET = 2048   # max batch tile (mult. of 128); peak live acts ~9 MiB at 2048
_TB_MIN = 512       # below this a grid step is dominated by ~0.35 us pipeline cost


def _round_up(a, m):
    return ((a + m - 1) // m) * m


def _choose_tile(batch):
    """Pick (tb, padded_batch). tb is a multiple of 128 (or the full small
    batch); aims for >=4 tiles so v7x's two TensorCores both get work while
    keeping tb in [512, 2048] to amortize per-grid-step overhead."""
    if batch <= _TB_MIN:
        return batch, batch
    padded = _round_up(batch, 128)
    tb = _round_up(pl.cdiv(padded, 4), 128)
    tb = max(_TB_MIN, min(_TB_TARGET, tb))
    padded = _round_up(padded, tb)
    return tb, padded


def convert_params(params):
    """One-time conversion of math-layout params to kernel layout (hoisted out
    of the per-call path).

    Layers 1-4: W^T as (out, in) bf16, bias as (out, 1) f32.
    Layer 5   : W as (64, 1) bf16 column, bias as (1, 1) f32.
    """
    kparams = []
    n = len(params)
    for i, (w, b) in enumerate(params):
        if i < n - 1:
            kw = jnp.transpose(w).astype(jnp.bfloat16)      # (out, in)
            kb = b.reshape(-1, 1).astype(jnp.float32)       # (out, 1)
        else:
            kw = w.astype(jnp.bfloat16)                     # (64, 1)
            kb = b.reshape(1, 1).astype(jnp.float32)        # (1, 1)
        kparams.append((kw, kb))
    return kparams


@jax.jit
def modified_net_forward(x, kparams):
    """x: (batch, in_features) f32; kparams from convert_params()."""
    batch, in_features = x.shape
    tb, padded = _choose_tile(batch)

    if padded != batch:
        x = jnp.pad(x, ((0, padded - batch), (0, 0)))

    grid = (padded // tb,)

    flat_inputs = [x]
    in_specs = [pl.BlockSpec((tb, in_features), lambda i: (i, 0))]
    for w, b in kparams:
        flat_inputs += [w, b]
        # Constant index_map -> stays VMEM-resident across the grid; single
        # buffer (double-buffering a constant block only wastes VMEM).
        in_specs.append(pl.BlockSpec(w.shape, lambda i: (0, 0),
                                     pipeline_mode=pl.Buffered(1)))
        in_specs.append(pl.BlockSpec(b.shape, lambda i: (0, 0),
                                     pipeline_mode=pl.Buffered(1)))
    out_specs = pl.BlockSpec((1, tb), lambda i: (0, i))

    flops = 2 * padded * (in_features * 512 + 512 * 256 + 256 * 128
                          + 128 * 64 + 64 * 1)
    param_bytes = sum(int(w.size) * w.dtype.itemsize +
                      int(b.size) * b.dtype.itemsize for w, b in kparams)
    bytes_accessed = param_bytes + padded * in_features * 4 + padded * 4

    out_row = pl.pallas_call(
        mlp_kernel,
        out_shape=jax.ShapeDtypeStruct((1, padded), jnp.float32),
        grid_spec=pltpu.PrefetchScalarGridSpec(
            num_scalar_prefetch=0,
            grid=grid,
            in_specs=in_specs,
            out_specs=out_specs,
        ),
        compiler_params=pltpu.CompilerParams(
            dimension_semantics=("parallel",),
            # Explicit VMEM budget: safe on v7x (64 MiB/TC) and raises the
            # 16 MiB scoped default on v5e.
            vmem_limit_bytes=32 * 1024 * 1024,
        ),
        cost_estimate=pl.CostEstimate(
            flops=int(flops),
            transcendentals=0,
            bytes_accessed=int(bytes_accessed),
        ),
    )(*flat_inputs)

    return out_row[0, :batch].reshape(batch, 1)


def init_params(key, input_features):
    """Deterministic init matching nn.Linear's U(-1/sqrt(in), 1/sqrt(in)).

    Math layout: W is (in, out) f32 (transpose of PyTorch's (out, in)), b (out,).
    """
    dims = [input_features, 512, 256, 128, 64, 1]
    params = []
    for i in range(len(dims) - 1):
        fan_in, fan_out = dims[i], dims[i + 1]
        key, kw, kb = jax.random.split(key, 3)
        bound = 1.0 / jnp.sqrt(jnp.float32(fan_in))
        w = jax.random.uniform(kw, (fan_in, fan_out), jnp.float32,
                               minval=-bound, maxval=bound)
        b = jax.random.uniform(kb, (fan_out,), jnp.float32,
                               minval=-bound, maxval=bound)
        params.append((w, b))
    return params


def reference_forward(x, params):
    """Pure-JAX reference mirroring the kernel's numerics layer by layer:
    bf16 operands into the matmuls with f32 accumulation, f32 bias/ReLU,
    bf16 re-cast of layers 1-3, and an f32 VPU final layer with bf16 w5."""
    n = len(params)
    h = x.astype(jnp.bfloat16)
    for i, (w, b) in enumerate(params[:-1]):
        h = jnp.dot(h, w.astype(jnp.bfloat16),
                    preferred_element_type=jnp.float32) + b
        h = jnp.maximum(h, 0.0)
        if i < n - 2:                       # layers 1-3 feed the MXU in bf16
            h = h.astype(jnp.bfloat16)
    w5, b5 = params[-1]                     # layer 5 runs on the VPU in f32
    return jnp.dot(h, w5.astype(jnp.bfloat16).astype(jnp.float32)) + b5


if __name__ == "__main__":
    key = jax.random.PRNGKey(0)
    key, kx = jax.random.split(key)

    input_features = 32
    params = init_params(key, input_features)
    kparams = convert_params(params)        # one-time layout/cast, hoisted

    # Small batch: single full-batch tile path.
    batch = 8
    x = jax.random.normal(kx, (batch, input_features), jnp.float32)
    out = jax.block_until_ready(modified_net_forward(x, kparams))
    ref = reference_forward(x, params)
    assert out.shape == (batch, 1), out.shape
    assert jnp.allclose(out, ref, atol=1e-2, rtol=1e-2), \
        f"max abs err {jnp.max(jnp.abs(out - ref))}"

    # Padded multi-tile path (grid > 1) to exercise the tiled fast path.
    batch2 = 640
    key, kx2 = jax.random.split(key)
    x2 = jax.random.normal(kx2, (batch2, input_features), jnp.float32)
    out2 = jax.block_until_ready(modified_net_forward(x2, kparams))
    ref2 = reference_forward(x2, params)
    assert out2.shape == (batch2, 1), out2.shape
    assert jnp.allclose(out2, ref2, atol=1e-2, rtol=1e-2), \
        f"max abs err {jnp.max(jnp.abs(out2 - ref2))}"

    print("KERNEL_OK")
</pallas_src>

<mosaic_0001>
module attributes {stable_mosaic.version = 11 : i64} {
  func.func @mlp_kernel(%arg0: i32, %arg1: memref<8x32xf32, #tpu.memory_space<vmem>>, %arg2: memref<512x32xbf16, #tpu.memory_space<vmem>>, %arg3: memref<512x1xf32, #tpu.memory_space<vmem>>, %arg4: memref<256x512xbf16, #tpu.memory_space<vmem>>, %arg5: memref<256x1xf32, #tpu.memory_space<vmem>>, %arg6: memref<128x256xbf16, #tpu.memory_space<vmem>>, %arg7: memref<128x1xf32, #tpu.memory_space<vmem>>, %arg8: memref<64x128xbf16, #tpu.memory_space<vmem>>, %arg9: memref<64x1xf32, #tpu.memory_space<vmem>>, %arg10: memref<64x1xbf16, #tpu.memory_space<vmem>>, %arg11: memref<1x1xf32, #tpu.memory_space<vmem>>, %arg12: memref<1x8xf32, #tpu.memory_space<vmem>>) attributes {dimension_semantics = [#tpu.dimension_semantics<parallel>], iteration_bounds = array<i64: 1>, scalar_prefetch = 0 : i64, scratch_operands = 0 : i64, tpu.core_type = #tpu.core_type<tc>, window_params = [{transform_indices = @transform_0, window_bounds = array<i64: 8, 32>}, {pipeline_mode = #tpu.pipeline_mode<synchronous>, transform_indices = @transform_1, window_bounds = array<i64: 512, 32>}, {pipeline_mode = #tpu.pipeline_mode<synchronous>, transform_indices = @transform_2, window_bounds = array<i64: 512, 1>}, {pipeline_mode = #tpu.pipeline_mode<synchronous>, transform_indices = @transform_3, window_bounds = array<i64: 256, 512>}, {pipeline_mode = #tpu.pipeline_mode<synchronous>, transform_indices = @transform_4, window_bounds = array<i64: 256, 1>}, {pipeline_mode = #tpu.pipeline_mode<synchronous>, transform_indices = @transform_5, window_bounds = array<i64: 128, 256>}, {pipeline_mode = #tpu.pipeline_mode<synchronous>, transform_indices = @transform_6, window_bounds = array<i64: 128, 1>}, {pipeline_mode = #tpu.pipeline_mode<synchronous>, transform_indices = @transform_7, window_bounds = array<i64: 64, 128>}, {pipeline_mode = #tpu.pipeline_mode<synchronous>, transform_indices = @transform_8, window_bounds = array<i64: 64, 1>}, {pipeline_mode = #tpu.pipeline_mode<synchronous>, transform_indices = @transform_9, window_bounds = array<i64: 64, 1>}, {pipeline_mode = #tpu.pipeline_mode<synchronous>, transform_indices = @transform_10, window_bounds = array<i64: 1, 1>}, {transform_indices = @transform_11, window_bounds = array<i64: 1, 8>}]} {
    %c0 = arith.constant 0 : index
    %c0_0 = arith.constant 0 : index
    %0 = vector.load %arg1[%c0, %c0_0] : memref<8x32xf32, #tpu.memory_space<vmem>>, vector<8x32xf32>
    %1 = arith.truncf %0 : vector<8x32xf32> to vector<8x32xbf16>
    %c0_1 = arith.constant 0 : index
    %c0_2 = arith.constant 0 : index
    %2 = vector.load %arg2[%c0_1, %c0_2] : memref<512x32xbf16, #tpu.memory_space<vmem>>, vector<512x32xbf16>
    %cst = arith.constant dense<0.000000e+00> : vector<512x8xf32>
    %3 = tpu.matmul %2, %1, %cst {dimension_numbers = #tpu.dot_dimension_numbers<[1], [1], [0], [0], [0, 0, 1, 0], [], []>} : vector<512x32xbf16>, vector<8x32xbf16>, vector<512x8xf32> -> vector<512x8xf32>
    %c0_3 = arith.constant 0 : index
    %c0_4 = arith.constant 0 : index
    %4 = vector.load %arg3[%c0_3, %c0_4] : memref<512x1xf32, #tpu.memory_space<vmem>>, vector<512x1xf32>
    %5 = vector.broadcast %4 : vector<512x1xf32> to vector<512x8xf32>
    %6 = arith.addf %3, %5 : vector<512x8xf32>
    %cst_5 = arith.constant 0.000000e+00 : f32
    %7 = vector.broadcast %cst_5 : f32 to vector<512x8xf32>
    %8 = arith.maximumf %6, %7 : vector<512x8xf32>
    %9 = arith.truncf %8 : vector<512x8xf32> to vector<512x8xbf16>
    %c0_6 = arith.constant 0 : index
    %c0_7 = arith.constant 0 : index
    %10 = vector.load %arg4[%c0_6, %c0_7] : memref<256x512xbf16, #tpu.memory_space<vmem>>, vector<256x512xbf16>
    %cst_8 = arith.constant dense<0.000000e+00> : vector<256x8xf32>
    %11 = tpu.matmul %10, %9, %cst_8 {dimension_numbers = #tpu.dot_dimension_numbers<[1], [0], [0], [1], [0, 0, 1, 1], [], []>} : vector<256x512xbf16>, vector<512x8xbf16>, vector<256x8xf32> -> vector<256x8xf32>
    %c0_9 = arith.constant 0 : index
    %c0_10 = arith.constant 0 : index
    %12 = vector.load %arg5[%c0_9, %c0_10] : memref<256x1xf32, #tpu.memory_space<vmem>>, vector<256x1xf32>
    %13 = vector.broadcast %12 : vector<256x1xf32> to vector<256x8xf32>
    %14 = arith.addf %11, %13 : vector<256x8xf32>
    %cst_11 = arith.constant 0.000000e+00 : f32
    %15 = vector.broadcast %cst_11 : f32 to vector<256x8xf32>
    %16 = arith.maximumf %14, %15 : vector<256x8xf32>
    %17 = arith.truncf %16 : vector<256x8xf32> to vector<256x8xbf16>
    %c0_12 = arith.constant 0 : index
    %c0_13 = arith.constant 0 : index
    %18 = vector.load %arg6[%c0_12, %c0_13] : memref<128x256xbf16, #tpu.memory_space<vmem>>, vector<128x256xbf16>
    %cst_14 = arith.constant dense<0.000000e+00> : vector<128x8xf32>
    %19 = tpu.matmul %18, %17, %cst_14 {dimension_numbers = #tpu.dot_dimension_numbers<[1], [0], [0], [1], [0, 0, 1, 1], [], []>} : vector<128x256xbf16>, vector<256x8xbf16>, vector<128x8xf32> -> vector<128x8xf32>
    %c0_15 = arith.constant 0 : index
    %c0_16 = arith.constant 0 : index
    %20 = vector.load %arg7[%c0_15, %c0_16] : memref<128x1xf32, #tpu.memory_space<vmem>>, vector<128x1xf32>
    %21 = vector.broadcast %20 : vector<128x1xf32> to vector<128x8xf32>
    %22 = arith.addf %19, %21 : vector<128x8xf32>
    %cst_17 = arith.constant 0.000000e+00 : f32
    %23 = vector.broadcast %cst_17 : f32 to vector<128x8xf32>
    %24 = arith.maximumf %22, %23 : vector<128x8xf32>
    %25 = arith.truncf %24 : vector<128x8xf32> to vector<128x8xbf16>
    %c0_18 = arith.constant 0 : index
    %c0_19 = arith.constant 0 : index
    %26 = vector.load %arg8[%c0_18, %c0_19] : memref<64x128xbf16, #tpu.memory_space<vmem>>, vector<64x128xbf16>
    %cst_20 = arith.constant dense<0.000000e+00> : vector<64x8xf32>
    %27 = tpu.matmul %26, %25, %cst_20 {dimension_numbers = #tpu.dot_dimension_numbers<[1], [0], [0], [1], [0, 0, 1, 1], [], []>} : vector<64x128xbf16>, vector<128x8xbf16>, vector<64x8xf32> -> vector<64x8xf32>
    %c0_21 = arith.constant 0 : index
    %c0_22 = arith.constant 0 : index
    %28 = vector.load %arg9[%c0_21, %c0_22] : memref<64x1xf32, #tpu.memory_space<vmem>>, vector<64x1xf32>
    %29 = vector.broadcast %28 : vector<64x1xf32> to vector<64x8xf32>
    %30 = arith.addf %27, %29 : vector<64x8xf32>
    %cst_23 = arith.constant 0.000000e+00 : f32
    %31 = vector.broadcast %cst_23 : f32 to vector<64x8xf32>
    %32 = arith.maximumf %30, %31 : vector<64x8xf32>
    %c0_24 = arith.constant 0 : index
    %c0_25 = arith.constant 0 : index
    %33 = vector.load %arg10[%c0_24, %c0_25] : memref<64x1xbf16, #tpu.memory_space<vmem>>, vector<64x1xbf16>
    %34 = arith.extf %33 : vector<64x1xbf16> to vector<64x1xf32>
    %35 = vector.broadcast %34 : vector<64x1xf32> to vector<64x8xf32>
    %36 = arith.mulf %32, %35 : vector<64x8xf32>
    %cst_26 = arith.constant dense<0.000000e+00> : vector<8xf32>
    %37 = vector.multi_reduction <add>, %36, %cst_26 [0] : vector<64x8xf32> to vector<8xf32>
    %38 = vector.shape_cast %37 : vector<8xf32> to vector<1x8xf32>
    %c0_27 = arith.constant 0 : index
    %c0_28 = arith.constant 0 : index
    %39 = vector.load %arg11[%c0_27, %c0_28] : memref<1x1xf32, #tpu.memory_space<vmem>>, vector<1x1xf32>
    %40 = vector.broadcast %39 : vector<1x1xf32> to vector<1x8xf32>
    %41 = arith.addf %38, %40 : vector<1x8xf32>
    %c0_29 = arith.constant 0 : index
    %c0_30 = arith.constant 0 : index
    %42 = vector.load %arg12[%c0_29, %c0_30] : memref<1x8xf32, #tpu.memory_space<vmem>>, vector<1x8xf32>
    tpu.vector_store %arg12[%c0_29, %c0_30], %41 {strides = array<i32>} : memref<1x8xf32, #tpu.memory_space<vmem>>, vector<1x8xf32>,
    return
  }
  func.func @transform_0(%arg0: i32) -> (i32, i32) {
    %c0_i32 = arith.constant 0 : i32
    %c0_i32_0 = arith.constant 0 : i32
    return %arg0, %c0_i32 : i32, i32
  }
  func.func @transform_1(%arg0: i32) -> (i32, i32) {
    %c0_i32 = arith.constant 0 : i32
    %c0_i32_0 = arith.constant 0 : i32
    %c0_i32_1 = arith.constant 0 : i32
    return %c0_i32, %c0_i32_0 : i32, i32
  }
  func.func @transform_2(%arg0: i32) -> (i32, i32) {
    %c0_i32 = arith.constant 0 : i32
    %c0_i32_0 = arith.constant 0 : i32
    %c0_i32_1 = arith.constant 0 : i32
    return %c0_i32, %c0_i32_0 : i32, i32
  }
  func.func @transform_3(%arg0: i32) -> (i32, i32) {
    %c0_i32 = arith.constant 0 : i32
    %c0_i32_0 = arith.constant 0 : i32
    %c0_i32_1 = arith.constant 0 : i32
    return %c0_i32, %c0_i32_0 : i32, i32
  }
  func.func @transform_4(%arg0: i32) -> (i32, i32) {
    %c0_i32 = arith.constant 0 : i32
    %c0_i32_0 = arith.constant 0 : i32
    %c0_i32_1 = arith.constant 0 : i32
    return %c0_i32, %c0_i32_0 : i32, i32
  }
  func.func @transform_5(%arg0: i32) -> (i32, i32) {
    %c0_i32 = arith.constant 0 : i32
    %c0_i32_0 = arith.constant 0 : i32
    %c0_i32_1 = arith.constant 0 : i32
    return %c0_i32, %c0_i32_0 : i32, i32
  }
  func.func @transform_6(%arg0: i32) -> (i32, i32) {
    %c0_i32 = arith.constant 0 : i32
    %c0_i32_0 = arith.constant 0 : i32
    %c0_i32_1 = arith.constant 0 : i32
    return %c0_i32, %c0_i32_0 : i32, i32
  }
  func.func @transform_7(%arg0: i32) -> (i32, i32) {
    %c0_i32 = arith.constant 0 : i32
    %c0_i32_0 = arith.constant 0 : i32
    %c0_i32_1 = arith.constant 0 : i32
    return %c0_i32, %c0_i32_0 : i32, i32
  }
  func.func @transform_8(%arg0: i32) -> (i32, i32) {
    %c0_i32 = arith.constant 0 : i32
    %c0_i32_0 = arith.constant 0 : i32
    %c0_i32_1 = arith.constant 0 : i32
    return %c0_i32, %c0_i32_0 : i32, i32
  }
  func.func @transform_9(%arg0: i32) -> (i32, i32) {
    %c0_i32 = arith.constant 0 : i32
    %c0_i32_0 = arith.constant 0 : i32
    %c0_i32_1 = arith.constant 0 : i32
    return %c0_i32, %c0_i32_0 : i32, i32
  }
  func.func @transform_10(%arg0: i32) -> (i32, i32) {
    %c0_i32 = arith.constant 0 : i32
    %c0_i32_0 = arith.constant 0 : i32
    %c0_i32_1 = arith.constant 0 : i32
    return %c0_i32, %c0_i32_0 : i32, i32
  }
  func.func @transform_11(%arg0: i32) -> (i32, i32) {
    %c0_i32 = arith.constant 0 : i32
    %c0_i32_0 = arith.constant 0 : i32
    return %c0_i32, %arg0 : i32, i32
  }
}

</mosaic_0001>

<bundles_post_ra>
// kernel: modified_net_forward.1
= control target key start
LH: loop header
LB: loop body
LE: loop exit
PB: predicated region body
PF: predicated region fallthrough
CT: control target
= control target key end

     0   :  { %s4706_s0 = inlined_call_operand.vmem [shape: f32[8,32], index: 0, kind: input, shape index: {}]   ;;  %s4707_s1 = inlined_call_operand.vmem [shape: bf16[512,32], index: 1, kind: input, shape index: {}]   ;;  %s4708_s2 = inlined_call_operand.vmem [shape: f32[512,1], index: 2, kind: input, shape index: {}]   ;;  %s4709_s3 = inlined_call_operand.vmem [shape: bf16[256,512], index: 3, kind: input, shape index: {}]   ;;  %s4710_s4 = inlined_call_operand.vmem [shape: f32[256,1], index: 4, kind: input, shape index: {}]   ;;  %s4711_s5 = inlined_call_operand.vmem [shape: bf16[128,256], index: 5, kind: input, shape index: {}]   ;;  %s4712_s6 = inlined_call_operand.vmem [shape: f32[128,1], index: 6, kind: input, shape index: {}]   ;;  %s4713_s7 = inlined_call_operand.vmem [shape: bf16[64,128], index: 7, kind: input, shape index: {}]   ;;  %s4714_s8 = inlined_call_operand.vmem [shape: f32[64,1], index: 8, kind: input, shape index: {}]   ;;  %s4715_s9 = inlined_call_operand.vmem [shape: bf16[64,1], index: 9, kind: input, shape index: {}]   ;;  %s4716_s10 = inlined_call_operand.<no memory space> [shape: f32[1,1], index: 10, kind: input, shape index: {}]   ;;  %s4717_s11 = inlined_call_operand.hbm [shape: f32[1,8], index: 11, kind: output, shape index: {}]  }
   0x1   :  { %v16_v0 = vstv %s4716_s10 }
   0x2   :  { %17 = vst [vmem:[#allocation2] sm:$0x1] %v16_v0 }
   0x3   :  { %v124_v1 = vld [vmem:[%s4708_s2 + $0x80] sm:$0xff]  ;;  %vm652_vm0 = vcmask 261120   ;;  %v3447_v4 = vmov 0   ;;  %v125_v6 = vld [vmem:[%s4708_s2 + $0x88] sm:$0xff]  ;;  %v3269_v13 = vld [vmem:[%s4707_s1 + $0x10] sm:$0xff]  }
   0x4   :  { %v108_v2 = vld [vmem:[%s4708_s2] sm:$0xff]  ;;  %3256 = vset.pattern.permute.xlu1 %v3447_v4  ;;  %3255 = vset.pattern.permute.xlu0 %v3447_v4  ;;  %v109_v7 = vld [vmem:[%s4708_s2 + $0x8] sm:$0xff]  ;;  %v126_v16 = vld [vmem:[%s4708_s2 + $0x90] sm:$0xff] }
   0x5   :  { %v42_v3 = vld [vmem:[%s4706_s0] sm:$0xff]  ;;  %254 = vperm.xlu0 %3255, %v124_v1   ;;  %174 = vperm.xlu1 %3256, %v108_v2   ;;  %v157_v11 = vld [vmem:[%s4708_s2 + $0x188] sm:$0xff]  ;;  %v127_v17 = vld [vmem:[%s4708_s2 + $0x98] sm:$0xff] }
   0x6   :  { %v43_v5 = vpack.c.bf16 %v42_v3, %v42_v3  ;;  %v3267_v9 = vld [vmem:[%s4707_s1] sm:$0xff]   ;;  %v3268_v12 = vld [vmem:[%s4707_s1 + $0x8] sm:$0xff]   ;;  %v3270_v18 = vld [vmem:[%s4707_s1 + $0x18] sm:$0xff]  }
   0x7   :  { %3164 = vmatprep.mubr.msk.bf16.mxu0 %vm652_vm0, %v3267_v9  ;;  %v156_v10 = vld [vmem:[%s4708_s2 + $0x180] sm:$0xff]  ;;  %v141_v15 = vld [vmem:[%s4708_s2 + $0x108] sm:$0xff]  ;;  %v110_v20 = vld [vmem:[%s4708_s2 + $0x10] sm:$0xff] }
   0x8   :  { %3252 = vmatprep.subr.msk.bf16.mxu0 %vm652_vm0, %v43_v5  ;;  %v750_v8 = vsel %vm652_vm0, %v43_v5, 0  ;;  %v140_v14 = vld [vmem:[%s4708_s2 + $0x100] sm:$0xff]  ;;  %v111_v21 = vld [vmem:[%s4708_s2 + $0x18] sm:$0xff]  ;;  %v158_v22 = vld [vmem:[%s4708_s2 + $0x190] sm:$0xff] }
   0x9   :  { %3163 = vmatpush3.bf16.xpose.msra.mxu0 %v750_v8  ;;  %259 = vperm.xlu0 %3255, %v125_v6   ;;  %v3271_v19 = vld [vmem:[%s4707_s1 + $0x20] sm:$0xff]   ;;  %v159_v23 = vld [vmem:[%s4708_s2 + $0x198] sm:$0xff]  ;;  %v3272_v24 = vld [vmem:[%s4707_s1 + $0x28] sm:$0xff]  }
   0xa   :  { %179 = vperm.xlu1 %3256, %v109_v7   ;;  %v3273_v25 = vld [vmem:[%s4707_s1 + $0x30] sm:$0xff]   ;;  %v143_v27 = vld [vmem:[%s4708_s2 + $0x118] sm:$0xff]  ;;  %v128_v28 = vld [vmem:[%s4708_s2 + $0xa0] sm:$0xff] }
   0xb   :  { %v142_v26 = vld [vmem:[%s4708_s2 + $0x110] sm:$0xff]  ;;  %v129_v29 = vld [vmem:[%s4708_s2 + $0xa8] sm:$0xff]  ;;  %v3274_v30 = vld [vmem:[%s4707_s1 + $0x38] sm:$0xff]  }
   0xc   :  { %v3275_v31 = vld [vmem:[%s4707_s1 + $0x40] sm:$0xff]   ;;  %v113_v33 = vld [vmem:[%s4708_s2 + $0x28] sm:$0xff]  ;;  %v3277_v37 = vld [vmem:[%s4707_s1 + $0x50] sm:$0xff]  }
   0xd   :  { %414 = vperm.xlu0 %3255, %v156_v10   ;;  %v112_v32 = vld [vmem:[%s4708_s2 + $0x20] sm:$0xff]  ;;  %v161_v35 = vld [vmem:[%s4708_s2 + $0x1a8] sm:$0xff]  ;;  %v130_v40 = vld [vmem:[%s4708_s2 + $0xb0] sm:$0xff] }
   0xe   :  { %419 = vperm.xlu1 %3256, %v157_v11   ;;  %v160_v34 = vld [vmem:[%s4708_s2 + $0x1a0] sm:$0xff]  ;;  %v3276_v36 = vld [vmem:[%s4707_s1 + $0x48] sm:$0xff]   ;;  %v131_v41 = vld [vmem:[%s4708_s2 + $0xb8] sm:$0xff] }
   0xf   :  { %v144_v38 = vld [vmem:[%s4708_s2 + $0x120] sm:$0xff]  ;;  %v145_v39 = vld [vmem:[%s4708_s2 + $0x128] sm:$0xff]  ;;  %v3278_v42 = vld [vmem:[%s4707_s1 + $0x58] sm:$0xff]  }
  0x10   :  { %3165 = vmatmul.mubr.msk.bf16.vlgmr.msra.gmra.mrb[0].mxu0 %vm652_vm0, %v3268_v12  ;;  %v3279_v43 = vld [vmem:[%s4707_s1 + $0x60] sm:$0xff]   ;;  %v114_v44 = vld [vmem:[%s4708_s2 + $0x30] sm:$0xff]  ;;  %v115_v45 = vld [vmem:[%s4708_s2 + $0x38] sm:$0xff] }
  0x11   :  { %3168 = vmatprep.mubr.msk.bf16.mxu0 %vm652_vm0, %v3269_v13  ;;  %334 = vperm.xlu0 %3255, %v140_v14   ;;  %v162_v46 = vld [vmem:[%s4708_s2 + $0x1b0] sm:$0xff]  ;;  %v163_v47 = vld [vmem:[%s4708_s2 + $0x1b8] sm:$0xff]  ;;  %v3280_v48 = vld [vmem:[%s4707_s1 + $0x68] sm:$0xff]  }
  0x12   :  { %339 = vperm.xlu1 %3256, %v141_v15   ;;  %v3281_v49 = vld [vmem:[%s4707_s1 + $0x70] sm:$0xff]   ;;  %v147_v51 = vld [vmem:[%s4708_s2 + $0x138] sm:$0xff]  ;;  %v132_v52 = vld [vmem:[%s4708_s2 + $0xc0] sm:$0xff] }
  0x13   :  { %v146_v50 = vld [vmem:[%s4708_s2 + $0x130] sm:$0xff]  ;;  %v133_v53 = vld [vmem:[%s4708_s2 + $0xc8] sm:$0xff]  ;;  %v3282_v54 = vld [vmem:[%s4707_s1 + $0x78] sm:$0xff]  }
  0x14   :  { %v3283_v55 = vld [vmem:[%s4707_s1 + $0x80] sm:$0xff]   ;;  %v117_v57 = vld [vmem:[%s4708_s2 + $0x48] sm:$0xff]  ;;  %v3285_v61 = vld [vmem:[%s4707_s1 + $0x90] sm:$0xff]  }
  0x15   :  { %264 = vperm.xlu0 %3255, %v126_v16   ;;  %v116_v56 = vld [vmem:[%s4708_s2 + $0x40] sm:$0xff]  ;;  %v165_v59 = vld [vmem:[%s4708_s2 + $0x1c8] sm:$0xff]  ;;  %v134_v0 = vld [vmem:[%s4708_s2 + $0xd0] sm:$0xff] }
  0x16   :  { %269 = vperm.xlu1 %3256, %v127_v17   ;;  %v164_v58 = vld [vmem:[%s4708_s2 + $0x1c0] sm:$0xff]  ;;  %v3284_v60 = vld [vmem:[%s4707_s1 + $0x88] sm:$0xff]   ;;  %v135_v1 = vld [vmem:[%s4708_s2 + $0xd8] sm:$0xff] }
  0x17   :  { %v148_v62 = vld [vmem:[%s4708_s2 + $0x140] sm:$0xff]  ;;  %v149_v63 = vld [vmem:[%s4708_s2 + $0x148] sm:$0xff]  ;;  %v3286_v2 = vld [vmem:[%s4707_s1 + $0x98] sm:$0xff]  }
  0x18   :  { %3169 = vmatmul.mubr.msk.bf16.gmra.mrb[4].mxu0 %vm652_vm0, %v3270_v18  ;;  %v3287_v3 = vld [vmem:[%s4707_s1 + $0xa0] sm:$0xff]   ;;  %v118_v4 = vld [vmem:[%s4708_s2 + $0x50] sm:$0xff]  ;;  %v119_v5 = vld [vmem:[%s4708_s2 + $0x58] sm:$0xff] }
  0x19   :  { %3172 = vmatprep.mubr.msk.bf16.mxu0 %vm652_vm0, %v3271_v19  ;;  %184 = vperm.xlu0 %3255, %v110_v20   ;;  %v166_v6 = vld [vmem:[%s4708_s2 + $0x1d0] sm:$0xff]  ;;  %v167_v7 = vld [vmem:[%s4708_s2 + $0x1d8] sm:$0xff]  ;;  %v3288_v8 = vld [vmem:[%s4707_s1 + $0xa8] sm:$0xff]  }
  0x1a   :  { %189 = vperm.xlu1 %3256, %v111_v21   ;;  %v3289_v9 = vld [vmem:[%s4707_s1 + $0xb0] sm:$0xff]   ;;  %v151_v11 = vld [vmem:[%s4708_s2 + $0x158] sm:$0xff]  ;;  %v136_v12 = vld [vmem:[%s4708_s2 + $0xe0] sm:$0xff] }
  0x1b   :  { %v150_v10 = vld [vmem:[%s4708_s2 + $0x150] sm:$0xff]  ;;  %v137_v13 = vld [vmem:[%s4708_s2 + $0xe8] sm:$0xff]  ;;  %v3290_v14 = vld [vmem:[%s4707_s1 + $0xb8] sm:$0xff]  }
  0x1c   :  { %v3291_v15 = vld [vmem:[%s4707_s1 + $0xc0] sm:$0xff]   ;;  %v121_v17 = vld [vmem:[%s4708_s2 + $0x68] sm:$0xff] }
  0x1d   :  { %424 = vperm.xlu0 %3255, %v158_v22   ;;  %v120_v16 = vld [vmem:[%s4708_s2 + $0x60] sm:$0xff] }
  0x1e   :  { %429 = vperm.xlu1 %3256, %v159_v23  }
  0x20   :  { %3173 = vmatmul.mubr.msk.bf16.gmra.mrb[8].mxu0 %vm652_vm0, %v3272_v24 }
  0x21   :  { %3176 = vmatprep.mubr.msk.bf16.mxu0 %vm652_vm0, %v3273_v25  ;;  %344 = vperm.xlu0 %3255, %v142_v26  }
  0x22   :  { %349 = vperm.xlu1 %3256, %v143_v27  }
  0x25   :  { %274 = vperm.xlu0 %3255, %v128_v28  }
  0x26   :  { %279 = vperm.xlu1 %3256, %v129_v29  }
  0x28   :  { %3177 = vmatmul.mubr.msk.bf16.gmra.mrb[12].mxu0 %vm652_vm0, %v3274_v30 }
  0x29   :  { %3180 = vmatprep.mubr.msk.bf16.mxu0 %vm652_vm0, %v3275_v31  ;;  %194 = vperm.xlu0 %3255, %v112_v32  }
  0x2a   :  { %199 = vperm.xlu1 %3256, %v113_v33  }
  0x2d   :  { %434 = vperm.xlu0 %3255, %v160_v34  }
  0x2e   :  { %439 = vperm.xlu1 %3256, %v161_v35  }
  0x30   :  { %3181 = vmatmul.mubr.msk.bf16.gmra.mrb[16].mxu0 %vm652_vm0, %v3276_v36 }
  0x31   :  { %3184 = vmatprep.mubr.msk.bf16.mxu0 %vm652_vm0, %v3277_v37  ;;  %354 = vperm.xlu0 %3255, %v144_v38  }
  0x32   :  { %359 = vperm.xlu1 %3256, %v145_v39  }
  0x35   :  { %284 = vperm.xlu0 %3255, %v130_v40  }
  0x36   :  { %289 = vperm.xlu1 %3256, %v131_v41  }
  0x38   :  { %3185 = vmatmul.mubr.msk.bf16.gmra.mrb[20].mxu0 %vm652_vm0, %v3278_v42 }
  0x39   :  { %3188 = vmatprep.mubr.msk.bf16.mxu0 %vm652_vm0, %v3279_v43  ;;  %204 = vperm.xlu0 %3255, %v114_v44  }
  0x3a   :  { %209 = vperm.xlu1 %3256, %v115_v45  }
  0x3d   :  { %444 = vperm.xlu0 %3255, %v162_v46  }
  0x3e   :  { %449 = vperm.xlu1 %3256, %v163_v47  }
  0x40   :  { %3189 = vmatmul.mubr.msk.bf16.gmra.mrb[24].mxu0 %vm652_vm0, %v3280_v48 }
  0x41   :  { %3192 = vmatprep.mubr.msk.bf16.mxu0 %vm652_vm0, %v3281_v49  ;;  %364 = vperm.xlu0 %3255, %v146_v50  }
  0x42   :  { %369 = vperm.xlu1 %3256, %v147_v51  }
  0x45   :  { %294 = vperm.xlu0 %3255, %v132_v52  }
  0x46   :  { %299 = vperm.xlu1 %3256, %v133_v53  }
  0x48   :  { %3193 = vmatmul.mubr.msk.bf16.gmra.mrb[28].mxu0 %vm652_vm0, %v3282_v54 }
  0x49   :  { %3196 = vmatprep.mubr.msk.bf16.mxu0 %vm652_vm0, %v3283_v55  ;;  %214 = vperm.xlu0 %3255, %v116_v56  }
  0x4a   :  { %219 = vperm.xlu1 %3256, %v117_v57  }
  0x4d   :  { %454 = vperm.xlu0 %3255, %v164_v58  }
  0x4e   :  { %459 = vperm.xlu1 %3256, %v165_v59  }
  0x50   :  { %3197 = vmatmul.mubr.msk.bf16.gmra.mrb[32].mxu0 %vm652_vm0, %v3284_v60 }
  0x51   :  { %3200 = vmatprep.mubr.msk.bf16.mxu0 %vm652_vm0, %v3285_v61  ;;  %374 = vperm.xlu0 %3255, %v148_v62  }
  0x52   :  { %379 = vperm.xlu1 %3256, %v149_v63  }
  0x55   :  { %304 = vperm.xlu0 %3255, %v134_v0  }
  0x56   :  { %309 = vperm.xlu1 %3256, %v135_v1  }
  0x58   :  { %3201 = vmatmul.mubr.msk.bf16.gmra.mrb[36].mxu0 %vm652_vm0, %v3286_v2 }
  0x59   :  { %3204 = vmatprep.mubr.msk.bf16.mxu0 %vm652_vm0, %v3287_v3  ;;  %224 = vperm.xlu0 %3255, %v118_v4  }
  0x5a   :  { %229 = vperm.xlu1 %3256, %v119_v5  }
  0x5d   :  { %464 = vperm.xlu0 %3255, %v166_v6  }
  0x5e   :  { %469 = vperm.xlu1 %3256, %v167_v7  }
  0x60   :  { %3205 = vmatmul.mubr.msk.bf16.gmra.mrb[40].mxu0 %vm652_vm0, %v3288_v8 }
  0x61   :  { %3208 = vmatprep.mubr.msk.bf16.mxu0 %vm652_vm0, %v3289_v9  ;;  %384 = vperm.xlu0 %3255, %v150_v10  }
  0x62   :  { %389 = vperm.xlu1 %3256, %v151_v11  }
  0x65   :  { %314 = vperm.xlu0 %3255, %v136_v12  }
  0x66   :  { %319 = vperm.xlu1 %3256, %v137_v13  }
  0x68   :  { %3209 = vmatmul.mubr.msk.bf16.gmra.mrb[44].mxu0 %vm652_vm0, %v3290_v14 }
  0x69   :  { %18 = vsyncpa [#allocation4], 0  ;;  %3212 = vmatprep.mubr.msk.bf16.mxu0 %vm652_vm0, %v3291_v15  ;;  %234 = vperm.xlu0 %3255, %v120_v16   ;;  %v168_v18 = vld [vmem:[%s4708_s2 + $0x1e0] sm:$0xff]  ;;  %v169_v19 = vld [vmem:[%s4708_s2 + $0x1e8] sm:$0xff]  ;;  %vm2613_vm1 = vcmask 64512   ;;  %vm2646_vm2 = vcmask 57344  }
  0x6a   :  { %239 = vperm.xlu1 %3256, %v121_v17   ;;  %v3292_v20 = vld [vmem:[%s4707_s1 + $0xc8] sm:$0xff]   ;;  %v3293_v21 = vld [vmem:[%s4707_s1 + $0xd0] sm:$0xff]   ;;  %v152_v22 = vld [vmem:[%s4708_s2 + $0x160] sm:$0xff] }
  0x6b   :  { %v153_v23 = vld [vmem:[%s4708_s2 + $0x168] sm:$0xff]  ;;  %v138_v24 = vld [vmem:[%s4708_s2 + $0xf0] sm:$0xff]  ;;  %v139_v25 = vld [vmem:[%s4708_s2 + $0xf8] sm:$0xff] }
  0x6c   :  { %v3294_v26 = vld [vmem:[%s4707_s1 + $0xd8] sm:$0xff]   ;;  %v3295_v27 = vld [vmem:[%s4707_s1 + $0xe0] sm:$0xff]   ;;  %v122_v28 = vld [vmem:[%s4708_s2 + $0x70] sm:$0xff] }
  0x6d   :  { %474 = vperm.xlu0 %3255, %v168_v18   ;;  %v123_v29 = vld [vmem:[%s4708_s2 + $0x78] sm:$0xff]  ;;  %v170_v30 = vld [vmem:[%s4708_s2 + $0x1f0] sm:$0xff]  ;;  %v3296_v32 = vld [vmem:[%s4707_s1 + $0xe8] sm:$0xff]  }
  0x6e   :  { %479 = vperm.xlu1 %3256, %v169_v19   ;;  %v171_v31 = vld [vmem:[%s4708_s2 + $0x1f8] sm:$0xff]  ;;  %v3297_v33 = vld [vmem:[%s4707_s1 + $0xf0] sm:$0xff]   ;;  %v1217_v36 = vld [vmem:[%s4710_s4 + $0x80] sm:$0xff] }
  0x6f   :  { %v154_v34 = vld [vmem:[%s4708_s2 + $0x170] sm:$0xff]  ;;  %v155_v35 = vld [vmem:[%s4708_s2 + $0x178] sm:$0xff]  ;;  %v1218_v37 = vld [vmem:[%s4710_s4 + $0x88] sm:$0xff] }
  0x70   :  { %3213 = vmatmul.mubr.msk.bf16.gmra.mrb[48].mxu0 %vm652_vm0, %v3292_v20  ;;  %v3298_v38 = vld [vmem:[%s4707_s1 + $0xf8] sm:$0xff]   ;;  %v1201_v41 = vld [vmem:[%s4710_s4] sm:$0xff]  ;;  %v1202_v42 = vld [vmem:[%s4710_s4 + $0x8] sm:$0xff] }
  0x71   :  { %3216 = vmatprep.mubr.msk.bf16.mxu0 %vm652_vm0, %v3293_v21  ;;  %394 = vperm.xlu0 %3255, %v152_v22   ;;  %v1219_v45 = vld [vmem:[%s4710_s4 + $0x90] sm:$0xff]  ;;  %v1220_v46 = vld [vmem:[%s4710_s4 + $0x98] sm:$0xff]  ;;  %v1221_v53 = vld [vmem:[%s4710_s4 + $0xa0] sm:$0xff] }
  0x72   :  { %399 = vperm.xlu1 %3256, %v153_v23   ;;  %v1203_v49 = vld [vmem:[%s4710_s4 + $0x10] sm:$0xff]  ;;  %v1204_v50 = vld [vmem:[%s4710_s4 + $0x18] sm:$0xff]  ;;  %v1222_v54 = vld [vmem:[%s4710_s4 + $0xa8] sm:$0xff] }
  0x73   :  { %v1205_v57 = vld [vmem:[%s4710_s4 + $0x20] sm:$0xff]  ;;  %v1206_v58 = vld [vmem:[%s4710_s4 + $0x28] sm:$0xff]  ;;  %v1223_v61 = vld [vmem:[%s4710_s4 + $0xb0] sm:$0xff] }
  0x74   :  { %v1224_v62 = vld [vmem:[%s4710_s4 + $0xb8] sm:$0xff]  ;;  %v1207_v1 = vld [vmem:[%s4710_s4 + $0x30] sm:$0xff]  ;;  %v1225_v5 = vld [vmem:[%s4710_s4 + $0xc0] sm:$0xff] }
  0x75   :  { %324 = vperm.xlu0 %3255, %v138_v24   ;;  %v1208_v2 = vld [vmem:[%s4710_s4 + $0x38] sm:$0xff]  ;;  %v1226_v6 = vld [vmem:[%s4710_s4 + $0xc8] sm:$0xff]  ;;  %v1209_v9 = vld [vmem:[%s4710_s4 + $0x40] sm:$0xff] }
  0x76   :  { %329 = vperm.xlu1 %3256, %v139_v25   ;;  %v1210_v10 = vld [vmem:[%s4710_s4 + $0x48] sm:$0xff]  ;;  %v3301_v13 = vld [vmem:[%s4709_s3 + $0x4] ss:$16 sps:$4 sm:$0xff]   ;;  %v1228_v15 = vld [vmem:[%s4710_s4 + $0xd8] sm:$0xff] }
  0x77   :  { %v1227_v14 = vld [vmem:[%s4710_s4 + $0xd0] sm:$0xff]  ;;  %1745 = vmatprep.mubr.bf16.mxu1 %v3301_v13  ;;  %v1212_v19 = vld [vmem:[%s4710_s4 + $0x58] sm:$0xff]  ;;  %v1229_v22 = vld [vmem:[%s4710_s4 + $0xe0] sm:$0xff] }
  0x78   :  { %3217 = vmatmul.mubr.msk.bf16.gmra.mrb[52].mxu0 %vm652_vm0, %v3294_v26  ;;  %v1211_v18 = vld [vmem:[%s4710_s4 + $0x50] sm:$0xff]  ;;  %v1230_v23 = vld [vmem:[%s4710_s4 + $0xe8] sm:$0xff]  ;;  %v1213_v26 = vld [vmem:[%s4710_s4 + $0x60] sm:$0xff] }
  0x79   :  { %3220 = vmatprep.mubr.msk.bf16.mxu0 %vm652_vm0, %v3295_v27  ;;  %244 = vperm.xlu0 %3255, %v122_v28   ;;  %v1214_v27 = vld [vmem:[%s4710_s4 + $0x68] sm:$0xff] }
  0x7a   :  { %249 = vperm.xlu1 %3256, %v123_v29  }
  0x7d   :  { %484 = vperm.xlu0 %3255, %v170_v30   ;;  %v1231_v30 = vld [vmem:[%s4710_s4 + $0xf0] sm:$0xff] }
  0x7e   :  { %489 = vperm.xlu1 %3256, %v171_v31   ;;  %v1232_v31 = vld [vmem:[%s4710_s4 + $0xf8] sm:$0xff] }
  0x80   :  { %3221 = vmatmul.mubr.msk.bf16.gmra.mrb[56].mxu0 %vm652_vm0, %v3296_v32 }
  0x81   :  { %3224 = vmatprep.mubr.msk.bf16.mxu0 %vm652_vm0, %v3297_v33  ;;  %404 = vperm.xlu0 %3255, %v154_v34   ;;  %v1215_v34 = vld [vmem:[%s4710_s4 + $0x70] sm:$0xff] }
  0x82   :  { %409 = vperm.xlu1 %3256, %v155_v35   ;;  %v1216_v35 = vld [vmem:[%s4710_s4 + $0x78] sm:$0xff] }
  0x84   :  { %v3842_v39 = vpop.permute.xlu0 %254  ;;  %v3844_v40 = vpop.permute.xlu1 %174 }
  0x85   :  { %1315 = vperm.xlu0 %3255, %v1217_v36  }
  0x86   :  { %1320 = vperm.xlu1 %3256, %v1218_v37  }
  0x88   :  { %3225 = vmatmul.mubr.msk.bf16.gmra.mrb[60].mxu0 %vm652_vm0, %v3298_v38  ;;  %v3853_v43 = vpop.permute.xlu0 %259  ;;  %v2099_v38 = vld [vmem:[%s4712_s6] sm:$0xff] }
  0x89   :  { %v3855_v44 = vpop.permute.xlu1 %179  ;;  %1235 = vperm.xlu0 %3255, %v1201_v41   ;;  %v2100_v41 = vld [vmem:[%s4712_s6 + $0x8] sm:$0xff] }
  0x8a   :  { %1240 = vperm.xlu1 %3256, %v1202_v42  }
  0x8c   :  { %v3863_v47 = vpop.permute.xlu0 %414 }
  0x8d   :  { %v3865_v48 = vpop.permute.xlu1 %419  ;;  %1325 = vperm.xlu0 %3255, %v1219_v45  }
  0x8e   :  { %1330 = vperm.xlu1 %3256, %v1220_v46   ;;  %v2101_v46 = vld [vmem:[%s4712_s6 + $0x10] sm:$0xff] }
  0x90   :  { %v3873_v51 = vpop.permute.xlu0 %334 }
  0x91   :  { %v3875_v52 = vpop.permute.xlu1 %339  ;;  %1245 = vperm.xlu0 %3255, %v1203_v49   ;;  %v2102_v49 = vld [vmem:[%s4712_s6 + $0x18] sm:$0xff] }
  0x92   :  { %1250 = vperm.xlu1 %3256, %v1204_v50  }
  0x94   :  { %v3883_v55 = vpop.permute.xlu0 %264 }
  0x95   :  { %v3885_v56 = vpop.permute.xlu1 %269  ;;  %1335 = vperm.xlu0 %3255, %v1221_v53  }
  0x96   :  { %1340 = vperm.xlu1 %3256, %v1222_v54   ;;  %v2103_v54 = vld [vmem:[%s4712_s6 + $0x20] sm:$0xff] }
  0x98   :  { %v3893_v59 = vpop.permute.xlu0 %184 }
  0x99   :  { %v3895_v60 = vpop.permute.xlu1 %189  ;;  %1255 = vperm.xlu0 %3255, %v1205_v57   ;;  %v2104_v57 = vld [vmem:[%s4712_s6 + $0x28] sm:$0xff] }
  0x9a   :  { %1260 = vperm.xlu1 %3256, %v1206_v58  }
  0x9c   :  { %v3903_v63 = vpop.permute.xlu0 %424 }
  0x9d   :  { %v3905_v0 = vpop.permute.xlu1 %429  ;;  %1345 = vperm.xlu0 %3255, %v1223_v61  }
  0x9e   :  { %1350 = vperm.xlu1 %3256, %v1224_v62   ;;  %v2105_v62 = vld [vmem:[%s4712_s6 + $0x30] sm:$0xff] }
  0xa0   :  { %v3913_v3 = vpop.permute.xlu0 %344 }
  0xa1   :  { %v3915_v4 = vpop.permute.xlu1 %349  ;;  %1265 = vperm.xlu0 %3255, %v1207_v1   ;;  %v2106_v1 = vld [vmem:[%s4712_s6 + $0x38] sm:$0xff] }
  0xa2   :  { %1270 = vperm.xlu1 %3256, %v1208_v2  }
  0xa4   :  { %v3923_v7 = vpop.permute.xlu0 %274 }
  0xa5   :  { %v3925_v8 = vpop.permute.xlu1 %279  ;;  %1355 = vperm.xlu0 %3255, %v1225_v5  }
  0xa6   :  { %1360 = vperm.xlu1 %3256, %v1226_v6   ;;  %v2107_v6 = vld [vmem:[%s4712_s6 + $0x40] sm:$0xff] }
  0xa8   :  { %v3933_v11 = vpop.permute.xlu0 %194 }
  0xa9   :  { %v3935_v12 = vpop.permute.xlu1 %199  ;;  %1275 = vperm.xlu0 %3255, %v1209_v9   ;;  %v2108_v9 = vld [vmem:[%s4712_s6 + $0x48] sm:$0xff] }
  0xaa   :  { %1280 = vperm.xlu1 %3256, %v1210_v10  }
  0xac   :  { %v3946_v16 = vpop.permute.xlu0 %434 }
  0xad   :  { %v3948_v17 = vpop.permute.xlu1 %439  ;;  %1365 = vperm.xlu0 %3255, %v1227_v14   ;;  %v2109_v14 = vld [vmem:[%s4712_s6 + $0x50] sm:$0xff] }
  0xae   :  { %4718 = vst [vmem:[#allocation6_spill] sm:$0xff] %v3948_v17  ;;  %1370 = vperm.xlu1 %3256, %v1228_v15   ;;  %v2110_v15 = vld [vmem:[%s4712_s6 + $0x58] sm:$0xff] }
  0xb0   :  { %v3956_v20 = vpop.permute.xlu0 %354 }
  0xb1   :  { %v3958_v21 = vpop.permute.xlu1 %359  ;;  %1285 = vperm.xlu0 %3255, %v1211_v18  }
  0xb2   :  { %1290 = vperm.xlu1 %3256, %v1212_v19  }
  0xb4   :  { %v3966_v24 = vpop.permute.xlu0 %284 }
  0xb5   :  { %v3968_v25 = vpop.permute.xlu1 %289  ;;  %1375 = vperm.xlu0 %3255, %v1229_v22   ;;  %v2111_v22 = vld [vmem:[%s4712_s6 + $0x60] sm:$0xff] }
  0xb6   :  { %1380 = vperm.xlu1 %3256, %v1230_v23   ;;  %v2112_v23 = vld [vmem:[%s4712_s6 + $0x68] sm:$0xff] }
  0xb8   :  { %v3976_v28 = vpop.permute.xlu0 %204 }
  0xb9   :  { %v3978_v29 = vpop.permute.xlu1 %209  ;;  %1295 = vperm.xlu0 %3255, %v1213_v26  }
  0xba   :  { %1300 = vperm.xlu1 %3256, %v1214_v27  }
  0xbc   :  { %v3986_v32 = vpop.permute.xlu0 %444 }
  0xbd   :  { %v3988_v33 = vpop.permute.xlu1 %449  ;;  %1385 = vperm.xlu0 %3255, %v1231_v30   ;;  %v2113_v30 = vld [vmem:[%s4712_s6 + $0x70] sm:$0xff] }
  0xbe   :  { %4719 = vst [vmem:[#allocation7_spill] sm:$0xff] %v3988_v33  ;;  %1390 = vperm.xlu1 %3256, %v1232_v31   ;;  %v2114_v31 = vld [vmem:[%s4712_s6 + $0x78] sm:$0xff] }
  0xc0   :  { %v3996_v36 = vpop.permute.xlu0 %364 }
  0xc1   :  { %v3998_v37 = vpop.permute.xlu1 %369  ;;  %1305 = vperm.xlu0 %3255, %v1215_v34  }
  0xc2   :  { %1310 = vperm.xlu1 %3256, %v1216_v35  }
  0xc4   :  { %v4006_v42 = vpop.permute.xlu0 %294 }
  0xc5   :  { %v4008_v45 = vpop.permute.xlu1 %299  ;;  %2117 = vperm.xlu0 %3255, %v2099_v38  }
  0xc6   :  { %2122 = vperm.xlu1 %3256, %v2100_v41  }
  0xc8   :  { %v4016_v50 = vpop.permute.xlu0 %214 }
  0xc9   :  { %v4018_v53 = vpop.permute.xlu1 %219  ;;  %2127 = vperm.xlu0 %3255, %v2101_v46  }
  0xca   :  { %2132 = vperm.xlu1 %3256, %v2102_v49   ;;  %v2404_v49 = vld [vmem:[%s4714_s8] sm:$0xff] }
  0xcc   :  { %v4026_v58 = vpop.permute.xlu0 %454 }
  0xcd   :  { %4720 = vst [vmem:[#allocation8_spill] sm:$0xff] %v4026_v58  ;;  %v4028_v61 = vpop.permute.xlu1 %459  ;;  %2137 = vperm.xlu0 %3255, %v2103_v54   ;;  %v2405_v54 = vld [vmem:[%s4714_s8 + $0x8] sm:$0xff] }
  0xce   :  { %4721 = vst [vmem:[#allocation9_spill] sm:$0xff] %v4028_v61  ;;  %2142 = vperm.xlu1 %3256, %v2104_v57   ;;  %v2811_v57 = vld [vmem:[%s4715_s9] sm:$0xff]   ;;  %v2409_v58 = vld [vmem:[%s4714_s8 + $0x28] sm:$0xff] }
  0xd0   :  { %v4036_v2 = vpop.permute.xlu0 %374 }
  0xd1   :  { %v4038_v5 = vpop.permute.xlu1 %379  ;;  %2147 = vperm.xlu0 %3255, %v2105_v62  }
  0xd2   :  { %2152 = vperm.xlu1 %3256, %v2106_v1  }
  0xd4   :  { %v4046_v10 = vpop.permute.xlu0 %304 }
  0xd5   :  { %v4048_v13 = vpop.permute.xlu1 %309  ;;  %2157 = vperm.xlu0 %3255, %v2107_v6  }
  0xd6   :  { %2162 = vperm.xlu1 %3256, %v2108_v9  }
  0xd8   :  { %v4056_v18 = vpop.permute.xlu0 %224 }
  0xd9   :  { %v4058_v19 = vpop.permute.xlu1 %229  ;;  %2167 = vperm.xlu0 %3255, %v2109_v14  }
  0xda   :  { %2172 = vperm.xlu1 %3256, %v2110_v15   ;;  %v2812_v15 = vunpack.c.l.bf16 %v2811_v57 }
  0xdc   :  { %v4066_v26 = vpop.permute.xlu0 %464 }
  0xdd   :  { %4722 = vst [vmem:[#allocation10_spill] sm:$0xff] %v4066_v26  ;;  %v4068_v27 = vpop.permute.xlu1 %469  ;;  %2177 = vperm.xlu0 %3255, %v2111_v22   ;;  %v2813_v22 = vunpack.c.h.bf16 %v2811_v57 }
  0xde   :  { %4723 = vst [vmem:[#allocation11_spill] sm:$0xff] %v4068_v27  ;;  %2182 = vperm.xlu1 %3256, %v2112_v23  }
  0xe0   :  { %v4076_v34 = vpop.permute.xlu0 %384 }
  0xe1   :  { %v4078_v35 = vpop.permute.xlu1 %389  ;;  %2187 = vperm.xlu0 %3255, %v2113_v30  }
  0xe2   :  { %2192 = vperm.xlu1 %3256, %v2114_v31  }
  0xe3   :  { %v3166_v38 = vpop.f32.mrb[0].mxu0 }
  0xe4   :  { %v795_v41 = vadd.f32 %v3166_v38, %v3893_v59  ;;  %v786_v46 = vpop.f32.mrb[1].mxu0  ;;  %v4092_v9 = vpop.permute.xlu0 %314  ;;  %v2406_v38 = vld [vmem:[%s4714_s8 + $0x10] sm:$0xff] }
  0xe5   :  { %v3167_v62 = vpop.f32.mrb[2].mxu0  ;;  %v787_v1 = vadd.f32 %v786_v46, %v3844_v40  ;;  %v4094_v59 = vpop.permute.xlu1 %319  ;;  %2414 = vperm.xlu0 %3255, %v2404_v49   ;;  %v2407_v40 = vld [vmem:[%s4714_s8 + $0x18] sm:$0xff] }
  0xe6   :  { %v798_v6 = vadd.f32 %v3167_v62, %v3895_v60  ;;  %v789_v14 = vpop.f32.mrb[3].mxu0  ;;  %2419 = vperm.xlu1 %3256, %v2405_v54   ;;  %v1043_v23 = vmax.f32 %v795_v41, 0.0  ;;  %v2826_v60 = vld [vmem:[%s4715_s9 + $0x8] sm:$0xff]   ;;  %v3257_v62 = vpack.i.bf16 %v2813_v22, %v2812_v15 }
  0xe7   :  { %v790_v31 = vadd.f32 %v789_v14, %v3855_v44  ;;  %v1041_v46 = vmax.f32 %v787_v1, 0.0  ;;  %v2817_v14 = vunpack.c.h.bf16 %v2826_v60  ;;  %v2408_v1 = vld [vmem:[%s4714_s8 + $0x20] sm:$0xff] }
  0xe8   :  { %v1044_v30 = vmax.f32 %v798_v6, 0.0  ;;  %v4108_v41 = vpop.permute.xlu0 %234  ;;  %v2816_v6 = vunpack.c.l.bf16 %v2826_v60 }
  0xe9   :  { %v1042_v54 = vmax.f32 %v790_v31, 0.0  ;;  %v4110_v57 = vpop.permute.xlu1 %239  ;;  %2424 = vperm.xlu0 %3255, %v2406_v38  }
  0xea   :  { %v4106_v49 = vpack.c.bf16 %v1044_v30, %v1043_v23  ;;  %2429 = vperm.xlu1 %3256, %v2407_v40   ;;  %v3327_v30 = vld [vmem:[%s4709_s3 + $0xc] ss:$16 sps:$4 sm:$0xff]   ;;  %v3262_v60 = vpack.i.bf16 %v2817_v14, %v2816_v6 }
  0xeb   :  { %v3170_v44 = vpop.f32.mrb[4].mxu0  ;;  %v4116_v23 = vpack.c.bf16 %v1042_v54, %v1041_v46  ;;  %1906 = vmatprep.mubr.bf16.mxu0 %v3327_v30 }
  0xec   :  { %v811_v61 = vadd.f32 %v3170_v44, %v3976_v28  ;;  %v802_v27 = vpop.f32.mrb[5].mxu0  ;;  %v4123_v22 = vpop.permute.xlu0 %474 }
  0xed   :  { %v3171_v31 = vpop.f32.mrb[6].mxu0  ;;  %v803_v38 = vadd.f32 %v802_v27, %v3933_v11  ;;  %4724 = vst [vmem:[#allocation12_spill] sm:$0xff] %v4123_v22  ;;  %v4125_v40 = vpop.permute.xlu1 %479  ;;  %3258 = vperm.xlu0 %3255, %v3257_v62   ;;  %v2827_v11 = vld [vmem:[%s4715_s9 + $0x10] sm:$0xff]  }
  0xee   :  { %v814_v15 = vadd.f32 %v3171_v31, %v3978_v29  ;;  %4725 = vst [vmem:[#allocation13_spill] sm:$0xff] %v4125_v40  ;;  %v805_v28 = vpop.f32.mrb[7].mxu0  ;;  %2434 = vperm.xlu1 %3256, %v2408_v1   ;;  %v1047_v46 = vmax.f32 %v811_v61, 0.0 }
  0xef   :  { %v806_v44 = vadd.f32 %v805_v28, %v3935_v12  ;;  %v1045_v29 = vmax.f32 %v803_v38, 0.0  ;;  %v2820_v12 = vunpack.c.l.bf16 %v2827_v11  ;;  %v2410_v38 = vld [vmem:[%s4714_s8 + $0x30] sm:$0xff] }
  0xf0   :  { %v1048_v54 = vmax.f32 %v814_v15, 0.0  ;;  %v4136_v31 = vpop.permute.xlu0 %394 }
  0xf1   :  { %v1046_v30 = vmax.f32 %v806_v44, 0.0  ;;  %v4138_v62 = vpop.permute.xlu1 %399  ;;  %3263 = vperm.xlu0 %3255, %v3262_v60   ;;  %v2821_v44 = vunpack.c.h.bf16 %v2827_v11 }
  0xf2   :  { %v4134_v27 = vpack.c.bf16 %v1048_v54, %v1047_v46  ;;  %2439 = vperm.xlu1 %3256, %v2409_v58  }
  0xf3   :  { %v3174_v61 = vpop.f32.mrb[8].mxu0  ;;  %v4140_v6 = vpack.c.bf16 %v1046_v30, %v1045_v29 }
  0xf4   :  { %v827_v14 = vadd.f32 %v3174_v61, %v4056_v18  ;;  %v818_v1 = vpop.f32.mrb[9].mxu0  ;;  %v4148_v54 = vpop.permute.xlu0 %324  ;;  %v2411_v61 = vld [vmem:[%s4714_s8 + $0x38] sm:$0xff] }
  0xf5   :  { %v3175_v15 = vpop.f32.mrb[10].mxu0  ;;  %v819_v28 = vadd.f32 %v818_v1, %v4016_v50  ;;  %v4150_v60 = vpop.permute.xlu1 %329  ;;  %2444 = vperm.xlu0 %3255, %v2410_v38   ;;  %v2828_v50 = vld [vmem:[%s4715_s9 + $0x18] sm:$0xff]  }
  0xf6   :  { %v830_v46 = vadd.f32 %v3175_v15, %v4058_v19  ;;  %v821_v58 = vpop.f32.mrb[11].mxu0  ;;  %2587 = vperm.xlu1 %3256, %v2820_v12   ;;  %v1051_v29 = vmax.f32 %v827_v14, 0.0  ;;  %v2824_v12 = vunpack.c.l.bf16 %v2828_v50  ;;  %v2825_v14 = vunpack.c.h.bf16 %v2828_v50 }
  0xf7   :  { %v822_v30 = vadd.f32 %v821_v58, %v4018_v53  ;;  %v1049_v19 = vmax.f32 %v819_v28, 0.0 }
  0xf8   :  { %v1052_v18 = vmax.f32 %v830_v46, 0.0  ;;  %v245_v40 = vpop.permute.xlu0 %244 }
  0xf9   :  { %v1050_v15 = vmax.f32 %v822_v30, 0.0  ;;  %2449 = vperm.xlu0 %3255, %v2411_v61   ;;  %v250_v58 = vpop.permute.xlu1 %249 }
  0xfa   :  { %v4159_v1 = vpack.c.bf16 %v1052_v18, %v1051_v29  ;;  %2592 = vperm.xlu1 %3256, %v2821_v44   ;;  %v2635_v44 = vld [vmem:[#allocation2] sm:$0x1] }
  0xfb   :  { %v3178_v11 = vpop.f32.mrb[12].mxu0  ;;  %v4161_v38 = vpack.c.bf16 %v1050_v15, %v1049_v19 }
  0xfc   :  { %v843_v53 = vadd.f32 %v3178_v11, %v245_v40  ;;  %v834_v46 = vpop.f32.mrb[13].mxu0 }
  0xfd   :  { %v3179_v22 = vpop.f32.mrb[14].mxu0  ;;  %v835_v26 = vadd.f32 %v834_v46, %v4108_v41  ;;  %2597 = vperm.xlu0 %3255, %v2824_v12  }
  0xfe   :  { %v846_v17 = vadd.f32 %v3179_v22, %v250_v58  ;;  %v837_v33 = vpop.f32.mrb[15].mxu0  ;;  %2602 = vperm.xlu1 %3256, %v2825_v14   ;;  %v1055_v28 = vmax.f32 %v843_v53, 0.0 }
  0xff   :  { %v838_v18 = vadd.f32 %v837_v33, %v4110_v57  ;;  %v1053_v30 = vmax.f32 %v835_v26, 0.0 }
 0x100   :  { %v1056_v29 = vmax.f32 %v846_v17, 0.0 }
 0x101   :  { %v1054_v50 = vmax.f32 %v838_v18, 0.0  ;;  %2638 = vperm.xlu0 %3255, %v2635_v44  }
 0x102   :  { %v4165_v61 = vpack.c.bf16 %v1056_v29, %v1055_v28 }
 0x103   :  { %v3182_v40 = vpop.f32.mrb[16].mxu0  ;;  %v4167_v19 = vpack.c.bf16 %v1054_v50, %v1053_v30 }
 0x104   :  { %v859_v15 = vadd.f32 %v3182_v40, %v3883_v55  ;;  %v850_v41 = vpop.f32.mrb[17].mxu0 }
 0x105   :  { %v3183_v22 = vpop.f32.mrb[18].mxu0  ;;  %v851_v11 = vadd.f32 %v850_v41, %v3842_v39 }
 0x106   :  { %v862_v12 = vadd.f32 %v3183_v22, %v3885_v56  ;;  %v853_v17 = vpop.f32.mrb[19].mxu0  ;;  %v1059_v14 = vmax.f32 %v859_v15, 0.0 }
 0x107   :  { %v854_v26 = vadd.f32 %v853_v17, %v3853_v43  ;;  %v1057_v57 = vmax.f32 %v851_v11, 0.0 }
 0x108   :  { %v1060_v33 = vmax.f32 %v862_v12, 0.0 }
 0x109   :  { %v1058_v46 = vmax.f32 %v854_v26, 0.0 }
 0x10a   :  { %v1114_v53 = vpack.c.bf16 %v1060_v33, %v1059_v14 }
 0x10b   :  { %v3186_v58 = vpop.f32.mrb[20].mxu0  ;;  %v1113_v18 = vpack.c.bf16 %v1058_v46, %v1057_v57 }
 0x10c   :  { %v875_v28 = vadd.f32 %v3186_v58, %v3966_v24  ;;  %v866_v29 = vpop.f32.mrb[21].mxu0 }
 0x10d   :  { %v3187_v55 = vpop.f32.mrb[22].mxu0  ;;  %v867_v44 = vadd.f32 %v866_v29, %v3923_v7  ;;  %2862 = vmatprep.subr.bf16.mxu1 %v1113_v18 }
 0x10e   :  { %v878_v39 = vadd.f32 %v3187_v55, %v3968_v25  ;;  %v869_v56 = vpop.f32.mrb[23].mxu0  ;;  %2863 = vmatpush3.bf16.msra.mxu1 %v4116_v23  ;;  %v1063_v30 = vmax.f32 %v875_v28, 0.0 }
 0x10f   :  { %v870_v43 = vadd.f32 %v869_v56, %v3925_v8  ;;  %2864 = vmatprep.subr.bf16.mxu1 %v1114_v53  ;;  %v1061_v40 = vmax.f32 %v867_v44, 0.0 }
 0x110   :  { %v1064_v50 = vmax.f32 %v878_v39, 0.0 }
 0x111   :  { %v1062_v41 = vmax.f32 %v870_v43, 0.0 }
 0x112   :  { %v1116_v15 = vpack.c.bf16 %v1064_v50, %v1063_v30  ;;  %2865 = vmatpush3.bf16.msra.mxu1 %v4106_v49 }
 0x113   :  { %v3190_v24 = vpop.f32.mrb[24].mxu0  ;;  %v1115_v22 = vpack.c.bf16 %v1062_v41, %v1061_v40 }
 0x114   :  { %v891_v7 = vadd.f32 %v3190_v24, %v4046_v10  ;;  %v882_v11 = vpop.f32.mrb[25].mxu0 }
 0x115   :  { %v3191_v25 = vpop.f32.mrb[26].mxu0  ;;  %v883_v12 = vadd.f32 %v882_v11, %v4006_v42  ;;  %2866 = vmatprep.subr.bf16.mxu1 %v1115_v22 }
 0x116   :  { %v894_v23 = vadd.f32 %v3191_v25, %v4048_v13  ;;  %v885_v17 = vpop.f32.mrb[27].mxu0  ;;  %2867 = vmatpush3.bf16.msra.mxu1 %v4140_v6  ;;  %v1067_v8 = vmax.f32 %v891_v7, 0.0 }
 0x117   :  { %v886_v33 = vadd.f32 %v885_v17, %v4008_v45  ;;  %2868 = vmatprep.subr.bf16.mxu1 %v1116_v15  ;;  %v1065_v49 = vmax.f32 %v883_v12, 0.0 }
 0x118   :  { %v1068_v14 = vmax.f32 %v894_v23, 0.0 }
 0x119   :  { %v1066_v57 = vmax.f32 %v886_v33, 0.0 }
 0x11a   :  { %v1118_v26 = vpack.c.bf16 %v1068_v14, %v1067_v8  ;;  %2869 = vmatpush3.bf16.msra.mxu1 %v4134_v27 }
 0x11b   :  { %v3194_v10 = vpop.f32.mrb[28].mxu0  ;;  %v1117_v53 = vpack.c.bf16 %v1066_v57, %v1065_v49  ;;  %v4222_v57 = vpop.permute.xlu0 %484 }
 0x11c   :  { %v907_v42 = vadd.f32 %v3194_v10, %v4148_v54  ;;  %v898_v46 = vpop.f32.mrb[29].mxu0 }
 0x11d   :  { %v3195_v13 = vpop.f32.mrb[30].mxu0  ;;  %v899_v58 = vadd.f32 %v898_v46, %v4092_v9  ;;  %2870 = vmatprep.subr.bf16.mxu1 %v1117_v53 }
 0x11e   :  { %v910_v6 = vadd.f32 %v3195_v13, %v4150_v60  ;;  %v901_v28 = vpop.f32.mrb[31].mxu0  ;;  %2871 = vmatpush3.bf16.msra.mxu1 %v4161_v38  ;;  %v1071_v45 = vmax.f32 %v907_v42, 0.0  ;;  %v4226_v42 = vpop.permute.xlu1 %489 }
 0x11f   :  { %v902_v18 = vadd.f32 %v901_v28, %v4094_v59  ;;  %2872 = vmatprep.subr.bf16.mxu1 %v1118_v26  ;;  %v1069_v27 = vmax.f32 %v899_v58, 0.0 }
 0x120   :  { %v1072_v29 = vmax.f32 %v910_v6, 0.0 }
 0x121   :  { %v1070_v44 = vmax.f32 %v902_v18, 0.0 }
 0x122   :  { %v1120_v55 = vpack.c.bf16 %v1072_v29, %v1071_v45  ;;  %2873 = vmatpush3.bf16.msra.mxu1 %v4159_v1  ;;  %v3307_v29 = vld [vmem:[%s4709_s3 + $0x40] ss:$16 sps:$4 sm:$0xff]  }
 0x123   :  { %v3198_v54 = vpop.f32.mrb[32].mxu0  ;;  %v1119_v39 = vpack.c.bf16 %v1070_v44, %v1069_v27 }
 0x124   :  { %v923_v9 = vadd.f32 %v3198_v54, %v3913_v3  ;;  %v914_v56 = vpop.f32.mrb[33].mxu0  ;;  %v3299_v3 = vld [vmem:[%s4709_s3] ss:$16 sps:$4 sm:$0xff]   ;;  %v410_v54 = vpop.permute.xlu1 %409 }
 0x125   :  { %v3199_v60 = vpop.f32.mrb[34].mxu0  ;;  %v915_v30 = vadd.f32 %v914_v56, %v3873_v51  ;;  %2874 = vmatprep.subr.bf16.mxu1 %v1119_v39 }
 0x126   :  { %v926_v38 = vadd.f32 %v3199_v60, %v3915_v4  ;;  %v917_v50 = vpop.f32.mrb[35].mxu0  ;;  %2875 = vmatpush3.bf16.msra.mxu1 %v4167_v19  ;;  %v1075_v59 = vmax.f32 %v923_v9, 0.0  ;;  %v3302_v4 = vld [vmem:[%s4709_s3 + $0x24] ss:$16 sps:$4 sm:$0xff]  }
 0x127   :  { %v918_v40 = vadd.f32 %v917_v50, %v3875_v52  ;;  %2876 = vmatprep.subr.bf16.mxu1 %v1120_v55  ;;  %v1073_v1 = vmax.f32 %v915_v30, 0.0 }
 0x128   :  { %v1076_v43 = vmax.f32 %v926_v38, 0.0 }
 0x129   :  { %v1074_v41 = vmax.f32 %v918_v40, 0.0  ;;  %v3310_v40 = vld [vmem:[%s4709_s3 + $0x60] ss:$16 sps:$4 sm:$0xff]  }
 0x12a   :  { %v4196_v15 = vpack.c.bf16 %v1076_v43, %v1075_v59  ;;  %2877 = vmatpush3.bf16.msra.mxu1 %v4165_v61 }
 0x12b   :  { %v3202_v51 = vpop.f32.mrb[36].mxu0  ;;  %v4205_v19 = vpack.c.bf16 %v1074_v41, %v1073_v1 }
 0x12c   :  { %v939_v52 = vadd.f32 %v3202_v51, %v3996_v36  ;;  %v930_v24 = vpop.f32.mrb[37].mxu0  ;;  %v3304_v36 = vld [vmem:[%s4709_s3 + $0x20] ss:$16 sps:$4 sm:$0xff]  }
 0x12d   :  { %v3203_v22 = vpop.f32.mrb[38].mxu0  ;;  %v931_v7 = vadd.f32 %v930_v24, %v3956_v20  ;;  %1746 = vmatmul.mubr.bf16.vlgmr.msra.gmra.mrb[0].mxu1 %v3299_v3  ;;  %v3305_v20 = vld [vmem:[%s4709_s3 + $0x44] ss:$16 sps:$4 sm:$0xff]  }
 0x12e   :  { %v942_v11 = vadd.f32 %v3203_v22, %v3998_v37  ;;  %v933_v25 = vpop.f32.mrb[39].mxu0  ;;  %1753 = vmatprep.mubr.bf16.mxu1 %v3302_v4  ;;  %v1079_v12 = vmax.f32 %v939_v52, 0.0 }
 0x12f   :  { %v934_v23 = vadd.f32 %v933_v25, %v3958_v21  ;;  %v1077_v17 = vmax.f32 %v931_v7, 0.0 }
 0x130   :  { %v1080_v61 = vmax.f32 %v942_v11, 0.0 }
 0x131   :  { %v1078_v14 = vmax.f32 %v934_v23, 0.0 }
 0x132   :  { %v4211_v8 = vpack.c.bf16 %v1080_v61, %v1079_v12 }
 0x133   :  { %v3206_v33 = vpop.f32.mrb[40].mxu0  ;;  %v4219_v37 = vpack.c.bf16 %v1078_v14, %v1077_v17 }
 0x134   :  { %v955_v49 = vadd.f32 %v3206_v33, %v4076_v34  ;;  %v946_v26 = vpop.f32.mrb[41].mxu0 }
 0x135   :  { %v3207_v21 = vpop.f32.mrb[42].mxu0  ;;  %v947_v10 = vadd.f32 %v946_v26, %v4036_v2  ;;  %1754 = vmatmul.mubr.bf16.gmra.mrb[4].mxu1 %v3304_v36  ;;  %v405_v2 = vpop.permute.xlu0 %404 }
 0x136   :  { %v958_v53 = vadd.f32 %v3207_v21, %v4078_v35  ;;  %v949_v46 = vpop.f32.mrb[43].mxu0  ;;  %1761 = vmatprep.mubr.bf16.mxu1 %v3305_v20  ;;  %v1083_v13 = vmax.f32 %v955_v49, 0.0  ;;  %v3308_v35 = vld [vmem:[%s4709_s3 + $0x64] ss:$16 sps:$4 sm:$0xff]  }
 0x137   :  { %v950_v6 = vadd.f32 %v949_v46, %v4038_v5  ;;  %v1081_v28 = vmax.f32 %v947_v10, 0.0  ;;  %v4727_v10 = vld [vmem:[#allocation6_spill] sm:$0xff] }
 0x138   :  { %v1084_v58 = vmax.f32 %v958_v53, 0.0 }
 0x139   :  { %v1082_v34 = vmax.f32 %v950_v6, 0.0 }
 0x13a   :  { %v4229_v45 = vpack.c.bf16 %v1084_v58, %v1083_v13 }
 0x13b   :  { %v3210_v18 = vpop.f32.mrb[44].mxu0  ;;  %v4237_v27 = vpack.c.bf16 %v1082_v34, %v1081_v28  ;;  %v4728_v28 = vld [vmem:[#allocation10_spill] sm:$0xff] }
 0x13c   :  { %v971_v55 = vadd.f32 %v3210_v18, %v405_v2  ;;  %v962_v44 = vpop.f32.mrb[45].mxu0  ;;  %v4729_v18 = vld [vmem:[#allocation8_spill] sm:$0xff] }
 0x13d   :  { %v3211_v5 = vpop.f32.mrb[46].mxu0  ;;  %v963_v39 = vadd.f32 %v962_v44, %v4136_v31  ;;  %1762 = vmatmul.mubr.bf16.gmra.mrb[8].mxu1 %v3307_v29  ;;  %v3311_v31 = vld [vmem:[%s4709_s3 + $0x84] ss:$16 sps:$4 sm:$0xff]  }
 0x13e   :  { %v974_v9 = vadd.f32 %v3211_v5, %v410_v54  ;;  %v965_v56 = vpop.f32.mrb[47].mxu0  ;;  %1769 = vmatprep.mubr.bf16.mxu1 %v3308_v35  ;;  %v1087_v60 = vmax.f32 %v971_v55, 0.0  ;;  %v4730_v55 = vld [vmem:[#allocation11_spill] sm:$0xff] }
 0x13f   :  { %v966_v38 = vadd.f32 %v965_v56, %v4138_v62  ;;  %v1085_v50 = vmax.f32 %v963_v39, 0.0  ;;  %v4731_v39 = vld [vmem:[#allocation9_spill] sm:$0xff] }
 0x140   :  { %v1088_v30 = vmax.f32 %v974_v9, 0.0 }
 0x141   :  { %v1086_v43 = vmax.f32 %v966_v38, 0.0  ;;  %v3319_v38 = vld [vmem:[%s4709_s3 + $0xc0] ss:$16 sps:$4 sm:$0xff]  }
 0x142   :  { %v4241_v59 = vpack.c.bf16 %v1088_v30, %v1087_v60 }
 0x143   :  { %v3214_v1 = vpop.f32.mrb[48].mxu0  ;;  %v4249_v41 = vpack.c.bf16 %v1086_v43, %v1085_v50 }
 0x144   :  { %v987_v3 = vadd.f32 %v3214_v1, %v3903_v63  ;;  %v978_v51 = vpop.f32.mrb[49].mxu0  ;;  %v3313_v63 = vld [vmem:[%s4709_s3 + $0x80] ss:$16 sps:$4 sm:$0xff]  }
 0x145   :  { %v3215_v4 = vpop.f32.mrb[50].mxu0  ;;  %v979_v62 = vadd.f32 %v978_v51, %v3863_v47  ;;  %1770 = vmatmul.mubr.bf16.gmra.mrb[12].mxu1 %v3310_v40  ;;  %v3314_v47 = vld [vmem:[%s4709_s3 + $0xa4] ss:$16 sps:$4 sm:$0xff]  }
 0x146   :  { %v990_v52 = vadd.f32 %v3215_v4, %v3905_v0  ;;  %v981_v24 = vpop.f32.mrb[51].mxu0  ;;  %1777 = vmatprep.mubr.bf16.mxu1 %v3311_v31  ;;  %v1091_v22 = vmax.f32 %v987_v3, 0.0  ;;  %v4732_v3 = vld [vmem:[#allocation12_spill] sm:$0xff] }
 0x147   :  { %v982_v11 = vadd.f32 %v981_v24, %v3865_v48  ;;  %v1089_v25 = vmax.f32 %v979_v62, 0.0  ;;  %v4726_v48 = vld [vmem:[#allocation7_spill] sm:$0xff]  ;;  %v4733_v24 = vld [vmem:[#allocation13_spill] sm:$0xff] }
 0x148   :  { %v1092_v7 = vmax.f32 %v990_v52, 0.0 }
 0x149   :  { %v1090_v61 = vmax.f32 %v982_v11, 0.0 }
 0x14a   :  { %v1130_v12 = vpack.c.bf16 %v1092_v7, %v1091_v22 }
 0x14b   :  { %v3218_v23 = vpop.f32.mrb[52].mxu0  ;;  %v1129_v0 = vpack.c.bf16 %v1090_v61, %v1089_v25  ;;  %v3322_v25 = vld [vmem:[%s4709_s3 + $0xe0] ss:$16 sps:$4 sm:$0xff]  }
 0x14c   :  { %v1003_v17 = vadd.f32 %v3218_v23, %v3986_v32  ;;  %v994_v14 = vpop.f32.mrb[53].mxu0  ;;  %v3328_v61 = vld [vmem:[%s4709_s3 + $0x100] ss:$16 sps:$4 sm:$0xff]   ;;  %v3335_v23 = vld [vmem:[%s4709_s3 + $0x144] ss:$16 sps:$4 sm:$0xff]  }
 0x14d   :  { %v3219_v36 = vpop.f32.mrb[54].mxu0  ;;  %v995_v33 = vadd.f32 %v994_v14, %v3946_v16  ;;  %1778 = vmatmul.mubr.bf16.gmra.mrb[16].mxu1 %v3313_v63  ;;  %2974 = vmatprep.subr.bf16.mxu0 %v1129_v0  ;;  %v3316_v16 = vld [vmem:[%s4709_s3 + $0xa0] ss:$16 sps:$4 sm:$0xff]   ;;  %v3341_v14 = vld [vmem:[%s4709_s3 + $0x164] ss:$16 sps:$4 sm:$0xff]  }
 0x14e   :  { %v1006_v20 = vadd.f32 %v3219_v36, %v4726_v48  ;;  %v997_v49 = vpop.f32.mrb[55].mxu0  ;;  %2975 = vmatpush3.bf16.msra.mxu0 %v4205_v19  ;;  %1785 = vmatprep.mubr.bf16.mxu1 %v3314_v47  ;;  %v1095_v26 = vmax.f32 %v1003_v17, 0.0  ;;  %v3317_v19 = vld [vmem:[%s4709_s3 + $0xc4] ss:$16 sps:$4 sm:$0xff]   ;;  %v3333_v63 = vld [vmem:[%s4709_s3 + $0x120] ss:$16 sps:$4 sm:$0xff]  }
 0x14f   :  { %v998_v53 = vadd.f32 %v997_v49, %v4727_v10  ;;  %2976 = vmatprep.subr.bf16.mxu0 %v1130_v12  ;;  %v1093_v46 = vmax.f32 %v995_v33, 0.0  ;;  %v3325_v12 = vld [vmem:[%s4709_s3 + $0x8] ss:$16 sps:$4 sm:$0xff]   ;;  %v3337_v47 = vld [vmem:[%s4709_s3 + $0x4c] ss:$16 sps:$4 sm:$0xff]  }
 0x150   :  { %v1096_v21 = vmax.f32 %v1006_v20, 0.0  ;;  %v3339_v0 = vld [vmem:[%s4709_s3 + $0x140] ss:$16 sps:$4 sm:$0xff]   ;;  %v3340_v17 = vld [vmem:[%s4709_s3 + $0x48] ss:$16 sps:$4 sm:$0xff]  }
 0x151   :  { %v1094_v32 = vmax.f32 %v998_v53, 0.0  ;;  %v3343_v36 = vld [vmem:[%s4709_s3 + $0x6c] ss:$16 sps:$4 sm:$0xff]   ;;  %v3345_v33 = vld [vmem:[%s4709_s3 + $0x160] ss:$16 sps:$4 sm:$0xff]  }
 0x152   :  { %v1132_v13 = vpack.c.bf16 %v1096_v21, %v1095_v26  ;;  %2977 = vmatpush3.bf16.msra.mxu0 %v4196_v15  ;;  %v3346_v48 = vld [vmem:[%s4709_s3 + $0x68] ss:$16 sps:$4 sm:$0xff]   ;;  %v3347_v20 = vld [vmem:[%s4709_s3 + $0x184] ss:$16 sps:$4 sm:$0xff]   ;;  %v3349_v49 = vld [vmem:[%s4709_s3 + $0x8c] ss:$16 sps:$4 sm:$0xff]  }
 0x153   :  { %v3222_v58 = vpop.f32.mrb[56].mxu0  ;;  %v1131_v6 = vpack.c.bf16 %v1094_v32, %v1093_v46  ;;  %v3351_v26 = vld [vmem:[%s4709_s3 + $0x180] ss:$16 sps:$4 sm:$0xff]   ;;  %v3352_v21 = vld [vmem:[%s4709_s3 + $0x88] ss:$16 sps:$4 sm:$0xff]  }
 0x154   :  { %v1019_v34 = vadd.f32 %v3222_v58, %v4728_v28  ;;  %v1010_v29 = vpop.f32.mrb[57].mxu0  ;;  %v3353_v10 = vld [vmem:[%s4709_s3 + $0x1a4] ss:$16 sps:$4 sm:$0xff]   ;;  %v3355_v53 = vld [vmem:[%s4709_s3 + $0xac] ss:$16 sps:$4 sm:$0xff]  }
 0x155   :  { %v3223_v2 = vpop.f32.mrb[58].mxu0  ;;  %v1011_v35 = vadd.f32 %v1010_v29, %v4729_v18  ;;  %1786 = vmatmul.mubr.bf16.gmra.mrb[20].mxu1 %v3316_v16  ;;  %2978 = vmatprep.subr.bf16.mxu0 %v1131_v6  ;;  %v3357_v46 = vld [vmem:[%s4709_s3 + $0x1a0] ss:$16 sps:$4 sm:$0xff]   ;;  %v3359_v32 = vld [vmem:[%s4709_s3 + $0x1c4] ss:$16 sps:$4 sm:$0xff]  }
 0x156   :  { %v1022_v44 = vadd.f32 %v3223_v2, %v4730_v55  ;;  %v1013_v54 = vpop.f32.mrb[59].mxu0  ;;  %2979 = vmatpush3.bf16.msra.mxu0 %v4219_v37  ;;  %1793 = vmatprep.mubr.bf16.mxu1 %v3317_v19  ;;  %v1099_v15 = vmax.f32 %v1019_v34, 0.0  ;;  %v3320_v37 = vld [vmem:[%s4709_s3 + $0xe4] ss:$16 sps:$4 sm:$0xff]   ;;  %v3361_v16 = vld [vmem:[%s4709_s3 + $0xcc] ss:$16 sps:$4 sm:$0xff]  }
 0x157   :  { %v1014_v9 = vadd.f32 %v1013_v54, %v4731_v39  ;;  %2980 = vmatprep.subr.bf16.mxu0 %v1132_v13  ;;  %v1097_v56 = vmax.f32 %v1011_v35, 0.0  ;;  %v3358_v13 = vld [vmem:[%s4709_s3 + $0xa8] ss:$16 sps:$4 sm:$0xff]   ;;  %v3363_v58 = vld [vmem:[%s4709_s3 + $0x1c0] ss:$16 sps:$4 sm:$0xff]  }
 0x158   :  { %v1100_v5 = vmax.f32 %v1022_v44, 0.0  ;;  %v3364_v19 = vld [vmem:[%s4709_s3 + $0xc8] ss:$16 sps:$4 sm:$0xff]   ;;  %v3365_v6 = vld [vmem:[%s4709_s3 + $0x1e4] ss:$16 sps:$4 sm:$0xff]  }
 0x159   :  { %v1098_v30 = vmax.f32 %v1014_v9, 0.0  ;;  %v3367_v28 = vld [vmem:[%s4709_s3 + $0xec] ss:$16 sps:$4 sm:$0xff]   ;;  %v3369_v34 = vld [vmem:[%s4709_s3 + $0x1e0] ss:$16 sps:$4 sm:$0xff]  }
 0x15a   :  { %v1134_v60 = vpack.c.bf16 %v1100_v5, %v1099_v15  ;;  %2981 = vmatpush3.bf16.msra.mxu0 %v4211_v8  ;;  %v3370_v29 = vld [vmem:[%s4709_s3 + $0xe8] ss:$16 sps:$4 sm:$0xff]   ;;  %v3371_v2 = vld [vmem:[%s4709_s3 + $0x10c] ss:$16 sps:$4 sm:$0xff]  }
 0x15b   :  { %v3226_v50 = vpop.f32.mrb[60].mxu0  ;;  %v1133_v43 = vpack.c.bf16 %v1098_v30, %v1097_v56  ;;  %v3373_v18 = vld [vmem:[%s4709_s3 + $0x108] ss:$16 sps:$4 sm:$0xff]   ;;  %v3374_v35 = vld [vmem:[%s4709_s3 + $0x12c] ss:$16 sps:$4 sm:$0xff]  }
 0x15c   :  { %v1035_v40 = vadd.f32 %v3226_v50, %v4222_v57  ;;  %v1026_v1 = vpop.f32.mrb[61].mxu0  ;;  %v3376_v55 = vld [vmem:[%s4709_s3 + $0x128] ss:$16 sps:$4 sm:$0xff]   ;;  %v3377_v44 = vld [vmem:[%s4709_s3 + $0x14c] ss:$16 sps:$4 sm:$0xff]  }
 0x15d   :  { %v3227_v31 = vpop.f32.mrb[62].mxu0  ;;  %v1027_v51 = vadd.f32 %v1026_v1, %v4732_v3  ;;  %1794 = vmatmul.mubr.bf16.gmra.mrb[24].mxu1 %v3319_v38  ;;  %2982 = vmatprep.subr.bf16.mxu0 %v1133_v43  ;;  %v3379_v54 = vld [vmem:[%s4709_s3 + $0x148] ss:$16 sps:$4 sm:$0xff]   ;;  %v3380_v15 = vld [vmem:[%s4709_s3 + $0x16c] ss:$16 sps:$4 sm:$0xff]  }
 0x15e   :  { %v1038_v4 = vadd.f32 %v3227_v31, %v4226_v42  ;;  %v1029_v62 = vpop.f32.mrb[63].mxu0  ;;  %2983 = vmatpush3.bf16.msra.mxu0 %v4237_v27  ;;  %1801 = vmatprep.mubr.bf16.mxu1 %v3320_v37  ;;  %v1103_v8 = vmax.f32 %v1035_v40, 0.0  ;;  %v3323_v42 = vld [vmem:[%s4709_s3 + $0x104] ss:$16 sps:$4 sm:$0xff]   ;;  %v3382_v5 = vld [vmem:[%s4709_s3 + $0x168] ss:$16 sps:$4 sm:$0xff]  }
 0x15f   :  { %v1030_v22 = vadd.f32 %v1029_v62, %v4733_v24  ;;  %2984 = vmatprep.subr.bf16.mxu0 %v1134_v60  ;;  %v1101_v7 = vmax.f32 %v1027_v51, 0.0  ;;  %v3383_v39 = vld [vmem:[%s4709_s3 + $0x18c] ss:$16 sps:$4 sm:$0xff]   ;;  %v3385_v9 = vld [vmem:[%s4709_s3 + $0x188] ss:$16 sps:$4 sm:$0xff]  }
 0x160   :  { %v1104_v52 = vmax.f32 %v1038_v4, 0.0  ;;  %v3386_v56 = vld [vmem:[%s4709_s3 + $0x1ac] ss:$16 sps:$4 sm:$0xff]   ;;  %v3388_v60 = vld [vmem:[%s4709_s3 + $0x1a8] ss:$16 sps:$4 sm:$0xff]  }
 0x161   :  { %v1102_v57 = vmax.f32 %v1030_v22, 0.0  ;;  %v3389_v30 = vld [vmem:[%s4709_s3 + $0x1cc] ss:$16 sps:$4 sm:$0xff]   ;;  %v3391_v38 = vld [vmem:[%s4709_s3 + $0x1c8] ss:$16 sps:$4 sm:$0xff]  }
 0x162   :  { %v1136_v11 = vpack.c.bf16 %v1104_v52, %v1103_v8  ;;  %2985 = vmatpush3.bf16.msra.mxu0 %v4229_v45  ;;  %v3329_v45 = vld [vmem:[%s4709_s3 + $0x124] ss:$16 sps:$4 sm:$0xff]   ;;  %v3392_v50 = vld [vmem:[%s4709_s3 + $0x1ec] ss:$16 sps:$4 sm:$0xff]   ;;  %v3394_v37 = vld [vmem:[%s4709_s3 + $0x1e8] ss:$16 sps:$4 sm:$0xff]  }
 0x163   :  { %v1135_v27 = vpack.c.bf16 %v1102_v57, %v1101_v7  ;;  %v4445_v7 = vpop.permute.xlu0 %1315 }
 0x165   :  { %1802 = vmatmul.mubr.bf16.gmra.mrb[28].mxu1 %v3322_v25  ;;  %2986 = vmatprep.subr.bf16.mxu0 %v1135_v27 }
 0x166   :  { %2987 = vmatpush3.bf16.msra.mxu0 %v4249_v41  ;;  %1809 = vmatprep.mubr.bf16.mxu1 %v3323_v42  ;;  %v3331_v41 = vld [vmem:[%s4709_s3 + $0x2c] ss:$16 sps:$4 sm:$0xff]  }
 0x167   :  { %2988 = vmatprep.subr.bf16.mxu0 %v1136_v11  ;;  %v4447_v11 = vpop.permute.xlu1 %1320 }
 0x16a   :  { %2989 = vmatpush3.bf16.msra.mxu0 %v4241_v59  ;;  %v3334_v59 = vld [vmem:[%s4709_s3 + $0x28] ss:$16 sps:$4 sm:$0xff]  }
 0x16d   :  { %1810 = vmatmul.mubr.bf16.gmra.mrb[32].mxu1 %v3328_v61  ;;  %1907 = vmatmul.mubr.bf16.vlgmr.msra.gmra.mrb[64].mxu0 %v3325_v12  ;;  %v1236_v61 = vpop.permute.xlu0 %1235 }
 0x16e   :  { %1817 = vmatprep.mubr.bf16.mxu1 %v3329_v45  ;;  %1914 = vmatprep.mubr.bf16.mxu0 %v3331_v41  ;;  %v1241_v41 = vpop.permute.xlu1 %1240 }
 0x175   :  { %1818 = vmatmul.mubr.bf16.gmra.mrb[36].mxu1 %v3333_v63  ;;  %1915 = vmatmul.mubr.bf16.gmra.mrb[68].mxu0 %v3334_v59 }
 0x176   :  { %1825 = vmatprep.mubr.bf16.mxu1 %v3335_v23  ;;  %1922 = vmatprep.mubr.bf16.mxu0 %v3337_v47  ;;  %v4453_v23 = vpop.permute.xlu0 %1325 }
 0x17d   :  { %1826 = vmatmul.mubr.bf16.gmra.mrb[40].mxu1 %v3339_v0  ;;  %1923 = vmatmul.mubr.bf16.gmra.mrb[72].mxu0 %v3340_v17  ;;  %v4457_v17 = vpop.permute.xlu1 %1330 }
 0x17e   :  { %1833 = vmatprep.mubr.bf16.mxu1 %v3341_v14  ;;  %1930 = vmatprep.mubr.bf16.mxu0 %v3343_v36 }
 0x185   :  { %1834 = vmatmul.mubr.bf16.gmra.mrb[44].mxu1 %v3345_v33  ;;  %1931 = vmatmul.mubr.bf16.gmra.mrb[76].mxu0 %v3346_v48  ;;  %v1246_v33 = vpop.permute.xlu0 %1245 }
 0x186   :  { %1841 = vmatprep.mubr.bf16.mxu1 %v3347_v20  ;;  %1938 = vmatprep.mubr.bf16.mxu0 %v3349_v49  ;;  %v4461_v20 = vpop.permute.xlu1 %1250 }
 0x18d   :  { %1842 = vmatmul.mubr.bf16.gmra.mrb[48].mxu1 %v3351_v26  ;;  %1939 = vmatmul.mubr.bf16.gmra.mrb[80].mxu0 %v3352_v21 }
 0x18e   :  { %1849 = vmatprep.mubr.bf16.mxu1 %v3353_v10  ;;  %1946 = vmatprep.mubr.bf16.mxu0 %v3355_v53 }
 0x195   :  { %1850 = vmatmul.mubr.bf16.gmra.mrb[52].mxu1 %v3357_v46  ;;  %1947 = vmatmul.mubr.bf16.gmra.mrb[84].mxu0 %v3358_v13  ;;  %v4467_v46 = vpop.permute.xlu0 %1335  ;;  %v4469_v13 = vpop.permute.xlu1 %1340 }
 0x196   :  { %1857 = vmatprep.mubr.bf16.mxu1 %v3359_v32  ;;  %1954 = vmatprep.mubr.bf16.mxu0 %v3361_v16 }
 0x19d   :  { %1858 = vmatmul.mubr.bf16.gmra.mrb[56].mxu1 %v3363_v58  ;;  %1955 = vmatmul.mubr.bf16.gmra.mrb[88].mxu0 %v3364_v19 }
 0x19e   :  { %1865 = vmatprep.mubr.bf16.mxu1 %v3365_v6  ;;  %1962 = vmatprep.mubr.bf16.mxu0 %v3367_v28  ;;  %v4473_v28 = vpop.permute.xlu0 %1255 }
 0x1a5   :  { %1866 = vmatmul.mubr.bf16.gmra.mrb[60].mxu1 %v3369_v34  ;;  %1963 = vmatmul.mubr.bf16.gmra.mrb[92].mxu0 %v3370_v29  ;;  %v4477_v29 = vpop.permute.xlu1 %1260 }
 0x1a6   :  { %1970 = vmatprep.mubr.bf16.mxu0 %v3371_v2 }
 0x1ad   :  { %1971 = vmatmul.mubr.bf16.gmra.mrb[96].mxu0 %v3373_v18 }
 0x1ae   :  { %1978 = vmatprep.mubr.bf16.mxu0 %v3374_v35  ;;  %v4479_v35 = vpop.permute.xlu0 %1345 }
 0x1b5   :  { %1979 = vmatmul.mubr.bf16.gmra.mrb[100].mxu0 %v3376_v55 }
 0x1b6   :  { %1986 = vmatprep.mubr.bf16.mxu0 %v3377_v44 }
 0x1bd   :  { %1987 = vmatmul.mubr.bf16.gmra.mrb[104].mxu0 %v3379_v54  ;;  %v4483_v54 = vpop.permute.xlu1 %1350 }
 0x1be   :  { %1994 = vmatprep.mubr.bf16.mxu0 %v3380_v15 }
 0x1c5   :  { %1995 = vmatmul.mubr.bf16.gmra.mrb[108].mxu0 %v3382_v5 }
 0x1c6   :  { %2002 = vmatprep.mubr.bf16.mxu0 %v3383_v39  ;;  %v4487_v39 = vpop.permute.xlu0 %1265 }
 0x1cd   :  { %2003 = vmatmul.mubr.bf16.gmra.mrb[112].mxu0 %v3385_v9 }
 0x1ce   :  { %2010 = vmatprep.mubr.bf16.mxu0 %v3386_v56  ;;  %v4489_v56 = vpop.permute.xlu1 %1270 }
 0x1d5   :  { %2011 = vmatmul.mubr.bf16.gmra.mrb[116].mxu0 %v3388_v60 }
 0x1d6   :  { %2018 = vmatprep.mubr.bf16.mxu0 %v3389_v30 }
 0x1dd   :  { %2019 = vmatmul.mubr.bf16.gmra.mrb[120].mxu0 %v3391_v38 }
 0x1de   :  { %2026 = vmatprep.mubr.bf16.mxu0 %v3392_v50 }
 0x1e5   :  { %2027 = vmatmul.mubr.bf16.gmra.mrb[124].mxu0 %v3394_v37 }
 0x200   :  { %v2878_v43 = vpop.f32.mrb[0].mxu1 }
 0x201   :  { %v2879_v40 = vpop.f32.mrb[1].mxu1 }
 0x202   :  { %v4437_v1 = vadd.f32 %v2879_v40, %v2878_v43  ;;  %v2881_v31 = vpop.f32.mrb[2].mxu1  ;;  %v4495_v43 = vpop.permute.xlu0 %1355 }
 0x203   :  { %v2882_v3 = vpop.f32.mrb[3].mxu1  ;;  %v4497_v40 = vpop.permute.xlu1 %1360 }
 0x204   :  { %v4439_v51 = vadd.f32 %v2882_v3, %v2881_v31 }
 0x208   :  { %v2884_v4 = vpop.f32.mrb[4].mxu1 }
 0x209   :  { %v2885_v62 = vpop.f32.mrb[5].mxu1 }
 0x20a   :  { %v4441_v8 = vadd.f32 %v2885_v62, %v2884_v4  ;;  %v2887_v52 = vpop.f32.mrb[6].mxu1 }
 0x20b   :  { %v2888_v24 = vpop.f32.mrb[7].mxu1 }
 0x20c   :  { %v4443_v22 = vadd.f32 %v2888_v24, %v2887_v52  ;;  %v1748_v52 = vadd.f32 %v4437_v1, %v1236_v61  ;;  %v4510_v1 = vpop.permute.xlu1 %1280 }
 0x210   :  { %v2890_v57 = vpop.f32.mrb[8].mxu1 }
 0x211   :  { %v2891_v25 = vpop.f32.mrb[9].mxu1 }
 0x212   :  { %v4449_v42 = vadd.f32 %v2891_v25, %v2890_v57  ;;  %v2893_v27 = vpop.f32.mrb[10].mxu1 }
 0x213   :  { %v2894_v12 = vpop.f32.mrb[11].mxu1 }
 0x214   :  { %v4451_v45 = vadd.f32 %v2894_v12, %v2893_v27 }
 0x218   :  { %v2896_v63 = vpop.f32.mrb[12].mxu1 }
 0x219   :  { %v2897_v59 = vpop.f32.mrb[13].mxu1 }
 0x21a   :  { %v4455_v47 = vadd.f32 %v2897_v59, %v2896_v63  ;;  %v2899_v0 = vpop.f32.mrb[14].mxu1  ;;  %v1751_v59 = vadd.f32 %v4439_v51, %v1241_v41  ;;  %v1756_v41 = vadd.f32 %v4441_v8, %v1246_v33  ;;  %v4523_v8 = vpop.permute.xlu1 %1370 }
 0x21b   :  { %v2900_v14 = vpop.f32.mrb[15].mxu1 }
 0x21c   :  { %v4459_v36 = vadd.f32 %v2900_v14, %v2899_v0 }
 0x220   :  { %v2902_v48 = vpop.f32.mrb[16].mxu1 }
 0x221   :  { %v2903_v49 = vpop.f32.mrb[17].mxu1 }
 0x222   :  { %v4463_v26 = vadd.f32 %v2903_v49, %v2902_v48  ;;  %v2905_v21 = vpop.f32.mrb[18].mxu1  ;;  %v3397_v49 = vld [vmem:[%s4711_s5 + $0x4] ss:$8 sps:$4 sm:$0xff]  }
 0x223   :  { %v2906_v10 = vpop.f32.mrb[19].mxu1  ;;  %2307 = vmatprep.mubr.bf16.mxu1 %v3397_v49 }
 0x224   :  { %v4465_v53 = vadd.f32 %v2906_v10, %v2905_v21  ;;  %v4508_v10 = vpop.permute.xlu0 %1275 }
 0x228   :  { %v2908_v32 = vpop.f32.mrb[20].mxu1 }
 0x229   :  { %v2909_v16 = vpop.f32.mrb[21].mxu1 }
 0x22a   :  { %v4471_v58 = vadd.f32 %v2909_v16, %v2908_v32  ;;  %v2911_v19 = vpop.f32.mrb[22].mxu1 }
 0x22b   :  { %v2912_v6 = vpop.f32.mrb[23].mxu1 }
 0x22c   :  { %v4475_v34 = vadd.f32 %v2912_v6, %v2911_v19 }
 0x230   :  { %v2914_v2 = vpop.f32.mrb[24].mxu1 }
 0x231   :  { %v2915_v18 = vpop.f32.mrb[25].mxu1 }
 0x232   :  { %v4481_v55 = vadd.f32 %v2915_v18, %v2914_v2  ;;  %v2917_v44 = vpop.f32.mrb[26].mxu1 }
 0x233   :  { %v2918_v15 = vpop.f32.mrb[27].mxu1 }
 0x234   :  { %v4485_v5 = vadd.f32 %v2918_v15, %v2917_v44 }
 0x238   :  { %v2920_v9 = vpop.f32.mrb[28].mxu1 }
 0x239   :  { %v2921_v60 = vpop.f32.mrb[29].mxu1 }
 0x23a   :  { %v4491_v30 = vadd.f32 %v2921_v60, %v2920_v9  ;;  %v2923_v38 = vpop.f32.mrb[30].mxu1 }
 0x23b   :  { %v2924_v50 = vpop.f32.mrb[31].mxu1 }
 0x23c   :  { %v4493_v37 = vadd.f32 %v2924_v50, %v2923_v38  ;;  %v1759_v50 = vadd.f32 %v4443_v22, %v4461_v20 }
 0x240   :  { %v2926_v31 = vpop.f32.mrb[32].mxu1  ;;  %v2990_v3 = vpop.f32.mrb[64].mxu0 }
 0x241   :  { %v2927_v4 = vpop.f32.mrb[33].mxu1  ;;  %v2991_v62 = vpop.f32.mrb[65].mxu0 }
 0x242   :  { %v4500_v24 = vadd.f32 %v2927_v4, %v2926_v31  ;;  %v2992_v57 = vadd.f32 %v2991_v62, %v2990_v3  ;;  %v2929_v25 = vpop.f32.mrb[34].mxu1  ;;  %v2993_v27 = vpop.f32.mrb[66].mxu0 }
 0x243   :  { %v2930_v12 = vpop.f32.mrb[35].mxu1  ;;  %v2994_v63 = vpop.f32.mrb[67].mxu0 }
 0x244   :  { %v1909_v0 = vadd.f32 %v2992_v57, %v1748_v52  ;;  %v4503_v14 = vadd.f32 %v2930_v12, %v2929_v25  ;;  %v2995_v48 = vadd.f32 %v2994_v63, %v2993_v27  ;;  %v4521_v52 = vpop.permute.xlu0 %1365 }
 0x246   :  { %v1912_v21 = vadd.f32 %v2995_v48, %v1751_v59  ;;  %v2035_v61 = vmax.f32 %v1909_v0, 0.0  ;;  %v1764_v59 = vadd.f32 %v4449_v42, %v4473_v28 }
 0x248   :  { %v2036_v32 = vmax.f32 %v1912_v21, 0.0  ;;  %v2932_v16 = vpop.f32.mrb[36].mxu1  ;;  %v2996_v19 = vpop.f32.mrb[68].mxu0 }
 0x249   :  { %v2933_v6 = vpop.f32.mrb[37].mxu1  ;;  %v2997_v51 = vpop.f32.mrb[69].mxu0 }
 0x24a   :  { %v4513_v2 = vpack.c.bf16 %v2036_v32, %v2035_v61  ;;  %v4515_v18 = vadd.f32 %v2933_v6, %v2932_v16  ;;  %v2998_v44 = vadd.f32 %v2997_v51, %v2996_v19  ;;  %v2935_v15 = vpop.f32.mrb[38].mxu1  ;;  %v2999_v9 = vpop.f32.mrb[70].mxu0  ;;  %v1767_v32 = vadd.f32 %v4451_v45, %v4477_v29 }
 0x24b   :  { %v2936_v60 = vpop.f32.mrb[39].mxu1  ;;  %v3000_v38 = vpop.f32.mrb[71].mxu0 }
 0x24c   :  { %v1917_v31 = vadd.f32 %v2998_v44, %v1756_v41  ;;  %v4519_v3 = vadd.f32 %v2936_v60, %v2935_v15  ;;  %v3001_v4 = vadd.f32 %v3000_v38, %v2999_v9  ;;  %v1286_v41 = vpop.permute.xlu0 %1285  ;;  %v1291_v44 = vpop.permute.xlu1 %1290 }
 0x24e   :  { %v1920_v62 = vadd.f32 %v3001_v4, %v1759_v50  ;;  %v2037_v33 = vmax.f32 %v1917_v31, 0.0  ;;  %v1772_v50 = vadd.f32 %v4455_v47, %v4487_v39 }
 0x250   :  { %v2038_v57 = vmax.f32 %v1920_v62, 0.0  ;;  %v2938_v25 = vpop.f32.mrb[40].mxu1  ;;  %v3002_v27 = vpop.f32.mrb[72].mxu0 }
 0x251   :  { %v2939_v12 = vpop.f32.mrb[41].mxu1  ;;  %v3003_v63 = vpop.f32.mrb[73].mxu0 }
 0x252   :  { %v4527_v0 = vpack.c.bf16 %v2038_v57, %v2037_v33  ;;  %v4529_v22 = vadd.f32 %v2939_v12, %v2938_v25  ;;  %v3004_v20 = vadd.f32 %v3003_v63, %v3002_v27  ;;  %v2941_v48 = vpop.f32.mrb[42].mxu1  ;;  %v3005_v49 = vpop.f32.mrb[74].mxu0  ;;  %v1775_v25 = vadd.f32 %v4459_v36, %v4489_v56 }
 0x253   :  { %v2942_v21 = vpop.f32.mrb[43].mxu1  ;;  %v3006_v61 = vpop.f32.mrb[75].mxu0 }
 0x254   :  { %v1925_v16 = vadd.f32 %v3004_v20, %v1764_v59  ;;  %v4533_v19 = vadd.f32 %v2942_v21, %v2941_v48  ;;  %v3007_v6 = vadd.f32 %v3006_v61, %v3005_v49  ;;  %v4545_v20 = vpop.permute.xlu0 %1375  ;;  %v4547_v47 = vpop.permute.xlu1 %1380 }
 0x256   :  { %v1928_v51 = vadd.f32 %v3007_v6, %v1767_v32  ;;  %v2039_v42 = vmax.f32 %v1925_v16, 0.0  ;;  %v1780_v16 = vadd.f32 %v4463_v26, %v4508_v10 }
 0x258   :  { %v2040_v28 = vmax.f32 %v1928_v51, 0.0  ;;  %v2944_v15 = vpop.f32.mrb[44].mxu1  ;;  %v3008_v9 = vpop.f32.mrb[76].mxu0 }
 0x259   :  { %v2945_v60 = vpop.f32.mrb[45].mxu1  ;;  %v3009_v38 = vpop.f32.mrb[77].mxu0 }
 0x25a   :  { %v4537_v31 = vpack.c.bf16 %v2040_v28, %v2039_v42  ;;  %v4539_v4 = vadd.f32 %v2945_v60, %v2944_v15  ;;  %v3010_v45 = vadd.f32 %v3009_v38, %v3008_v9  ;;  %v2947_v29 = vpop.f32.mrb[46].mxu1  ;;  %v3011_v62 = vpop.f32.mrb[78].mxu0  ;;  %v1783_v9 = vadd.f32 %v4465_v53, %v4510_v1 }
 0x25b   :  { %v2948_v33 = vpop.f32.mrb[47].mxu1  ;;  %v3012_v57 = vpop.f32.mrb[79].mxu0 }
 0x25c   :  { %v1933_v27 = vadd.f32 %v3010_v45, %v1772_v50  ;;  %v4543_v12 = vadd.f32 %v2948_v33, %v2947_v29  ;;  %v3013_v63 = vadd.f32 %v3012_v57, %v3011_v62  ;;  %v1296_v29 = vpop.permute.xlu0 %1295  ;;  %v1301_v62 = vpop.permute.xlu1 %1300 }
 0x25e   :  { %v1936_v59 = vadd.f32 %v3013_v63, %v1775_v25  ;;  %v2041_v39 = vmax.f32 %v1933_v27, 0.0  ;;  %v1788_v63 = vadd.f32 %v4471_v58, %v1286_v41 }
 0x260   :  { %v2042_v48 = vmax.f32 %v1936_v59, 0.0  ;;  %v2950_v49 = vpop.f32.mrb[48].mxu1  ;;  %v3014_v21 = vpop.f32.mrb[80].mxu0 }
 0x261   :  { %v2951_v61 = vpop.f32.mrb[49].mxu1  ;;  %v3015_v32 = vpop.f32.mrb[81].mxu0 }
 0x262   :  { %v4551_v6 = vpack.c.bf16 %v2042_v48, %v2041_v39  ;;  %v4553_v36 = vadd.f32 %v2951_v61, %v2950_v49  ;;  %v3016_v56 = vadd.f32 %v3015_v32, %v3014_v21  ;;  %v2953_v51 = vpop.f32.mrb[50].mxu1  ;;  %v3017_v42 = vpop.f32.mrb[82].mxu0  ;;  %v1791_v61 = vadd.f32 %v4475_v34, %v1291_v44 }
 0x263   :  { %v2954_v28 = vpop.f32.mrb[51].mxu1  ;;  %v3018_v15 = vpop.f32.mrb[83].mxu0 }
 0x264   :  { %v1941_v60 = vadd.f32 %v3016_v56, %v1780_v16  ;;  %v4557_v38 = vadd.f32 %v2954_v28, %v2953_v51  ;;  %v3019_v50 = vadd.f32 %v3018_v15, %v3017_v42  ;;  %v4567_v42 = vpop.permute.xlu0 %1385  ;;  %v4569_v28 = vpop.permute.xlu1 %1390 }
 0x266   :  { %v1944_v45 = vadd.f32 %v3019_v50, %v1783_v9  ;;  %v2043_v26 = vmax.f32 %v1941_v60, 0.0 }
 0x268   :  { %v2044_v10 = vmax.f32 %v1944_v45, 0.0  ;;  %v2956_v33 = vpop.f32.mrb[52].mxu1  ;;  %v3020_v57 = vpop.f32.mrb[84].mxu0  ;;  %v1796_v45 = vadd.f32 %v4481_v55, %v1296_v29 }
 0x269   :  { %v2957_v25 = vpop.f32.mrb[53].mxu1  ;;  %v3021_v27 = vpop.f32.mrb[85].mxu0 }
 0x26a   :  { %v4560_v59 = vpack.c.bf16 %v2044_v10, %v2043_v26  ;;  %v4562_v39 = vadd.f32 %v2957_v25, %v2956_v33  ;;  %v3022_v53 = vadd.f32 %v3021_v27, %v3020_v57  ;;  %v2959_v1 = vpop.f32.mrb[54].mxu1  ;;  %v3023_v48 = vpop.f32.mrb[86].mxu0  ;;  %v1799_v27 = vadd.f32 %v4485_v5, %v1301_v62 }
 0x26b   :  { %v2960_v49 = vpop.f32.mrb[55].mxu1  ;;  %v3024_v21 = vpop.f32.mrb[87].mxu0 }
 0x26c   :  { %v1949_v32 = vadd.f32 %v3022_v53, %v1788_v63  ;;  %v4565_v16 = vadd.f32 %v2960_v49, %v2959_v1  ;;  %v3025_v56 = vadd.f32 %v3024_v21, %v3023_v48  ;;  %v1306_v49 = vpop.permute.xlu0 %1305  ;;  %v1311_v21 = vpop.permute.xlu1 %1310 }
 0x26e   :  { %v1952_v51 = vadd.f32 %v3025_v56, %v1791_v61  ;;  %v2045_v58 = vmax.f32 %v1949_v32, 0.0 }
 0x270   :  { %v2046_v41 = vmax.f32 %v1952_v51, 0.0  ;;  %v2962_v15 = vpop.f32.mrb[56].mxu1  ;;  %v3026_v9 = vpop.f32.mrb[88].mxu0 }
 0x271   :  { %v2963_v60 = vpop.f32.mrb[57].mxu1  ;;  %v3027_v50 = vpop.f32.mrb[89].mxu0 }
 0x272   :  { %v4572_v26 = vpack.c.bf16 %v2046_v41, %v2045_v58  ;;  %v4574_v34 = vadd.f32 %v2963_v60, %v2962_v15  ;;  %v3028_v44 = vadd.f32 %v3027_v50, %v3026_v9  ;;  %v2965_v10 = vpop.f32.mrb[58].mxu1  ;;  %v3029_v33 = vpop.f32.mrb[90].mxu0  ;;  %v1804_v58 = vadd.f32 %v4491_v30, %v1306_v49 }
 0x273   :  { %v2966_v57 = vpop.f32.mrb[59].mxu1  ;;  %v3030_v25 = vpop.f32.mrb[91].mxu0 }
 0x274   :  { %v1957_v63 = vadd.f32 %v3028_v44, %v1796_v45  ;;  %v4577_v53 = vadd.f32 %v2966_v57, %v2965_v10  ;;  %v3031_v1 = vadd.f32 %v3030_v25, %v3029_v33  ;;  %v1807_v45 = vadd.f32 %v4493_v37, %v1311_v21 }
 0x275   :  { %v1815_v37 = vadd.f32 %v4503_v14, %v4447_v11 }
 0x276   :  { %v1960_v48 = vadd.f32 %v3031_v1, %v1799_v27  ;;  %v2047_v61 = vmax.f32 %v1957_v63, 0.0  ;;  %v1812_v1 = vadd.f32 %v4500_v24, %v4445_v7 }
 0x278   :  { %v2048_v55 = vmax.f32 %v1960_v48, 0.0  ;;  %v2968_v29 = vpop.f32.mrb[60].mxu1  ;;  %v3032_v32 = vpop.f32.mrb[92].mxu0 }
 0x279   :  { %v2969_v56 = vpop.f32.mrb[61].mxu1  ;;  %v3033_v51 = vpop.f32.mrb[93].mxu0 }
 0x27a   :  { %v4580_v41 = vpack.c.bf16 %v2048_v55, %v2047_v61  ;;  %v4582_v15 = vadd.f32 %v2969_v56, %v2968_v29  ;;  %v3034_v5 = vadd.f32 %v3033_v51, %v3032_v32  ;;  %v2971_v62 = vpop.f32.mrb[62].mxu1  ;;  %v3035_v9 = vpop.f32.mrb[94].mxu0 }
 0x27b   :  { %v2972_v60 = vpop.f32.mrb[63].mxu1  ;;  %v3036_v50 = vpop.f32.mrb[95].mxu0 }
 0x27c   :  { %v1965_v44 = vadd.f32 %v3034_v5, %v1804_v58  ;;  %v4585_v10 = vadd.f32 %v2972_v60, %v2971_v62  ;;  %v3037_v33 = vadd.f32 %v3036_v50, %v3035_v9  ;;  %v1820_v62 = vadd.f32 %v4515_v18, %v4453_v23 }
 0x27d   :  { %v1823_v50 = vadd.f32 %v4519_v3, %v4457_v17  ;;  %v1828_v23 = vadd.f32 %v4529_v22, %v4467_v46  ;;  %v1831_v17 = vadd.f32 %v4533_v19, %v4469_v13  ;;  %v1836_v46 = vadd.f32 %v4539_v4, %v4479_v35 }
 0x27e   :  { %v1968_v57 = vadd.f32 %v3037_v33, %v1807_v45  ;;  %v2049_v25 = vmax.f32 %v1965_v44, 0.0  ;;  %v1839_v13 = vadd.f32 %v4543_v12, %v4483_v54  ;;  %v1844_v35 = vadd.f32 %v4553_v36, %v4495_v43 }
 0x27f   :  { %v1847_v54 = vadd.f32 %v4557_v38, %v4497_v40  ;;  %v1852_v43 = vadd.f32 %v4562_v39, %v4521_v52  ;;  %v1855_v40 = vadd.f32 %v4565_v16, %v4523_v8  ;;  %v1860_v52 = vadd.f32 %v4574_v34, %v4545_v20 }
 0x280   :  { %v2050_v27 = vmax.f32 %v1968_v57, 0.0  ;;  %v3038_v63 = vpop.f32.mrb[96].mxu0  ;;  %v1863_v8 = vadd.f32 %v4577_v53, %v4547_v47  ;;  %v1868_v20 = vadd.f32 %v4582_v15, %v4567_v42  ;;  %v1871_v47 = vadd.f32 %v4585_v10, %v4569_v28  ;;  %v3395_v42 = vld [vmem:[%s4711_s5] ss:$8 sps:$4 sm:$0xff]   ;;  %v3398_v28 = vld [vmem:[%s4711_s5 + $0x14] ss:$8 sps:$4 sm:$0xff]  }
 0x281   :  { %v3039_v30 = vpop.f32.mrb[97].mxu0  ;;  %v3401_v15 = vld [vmem:[%s4711_s5 + $0x24] ss:$8 sps:$4 sm:$0xff]   ;;  %v3403_v10 = vld [vmem:[%s4711_s5 + $0x20] ss:$8 sps:$4 sm:$0xff]  }
 0x282   :  { %v4589_v48 = vpack.c.bf16 %v2050_v27, %v2049_v25  ;;  %v3040_v49 = vadd.f32 %v3039_v30, %v3038_v63  ;;  %v3041_v61 = vpop.f32.mrb[98].mxu0 }
 0x283   :  { %v3042_v55 = vpop.f32.mrb[99].mxu0 }
 0x284   :  { %v1973_v21 = vadd.f32 %v3040_v49, %v1812_v1  ;;  %v3043_v29 = vadd.f32 %v3042_v55, %v3041_v61 }
 0x286   :  { %v1976_v32 = vadd.f32 %v3043_v29, %v1815_v37  ;;  %v2051_v56 = vmax.f32 %v1973_v21, 0.0 }
 0x288   :  { %v2052_v51 = vmax.f32 %v1976_v32, 0.0  ;;  %v3044_v58 = vpop.f32.mrb[100].mxu0 }
 0x289   :  { %v3045_v5 = vpop.f32.mrb[101].mxu0 }
 0x28a   :  { %v3046_v9 = vadd.f32 %v3045_v5, %v3044_v58  ;;  %v3047_v7 = vpop.f32.mrb[102].mxu0  ;;  %v2075_v24 = vpack.c.bf16 %v2052_v51, %v2051_v56 }
 0x28b   :  { %v3048_v60 = vpop.f32.mrb[103].mxu0 }
 0x28c   :  { %v1981_v45 = vadd.f32 %v3046_v9, %v1820_v62  ;;  %v3049_v44 = vadd.f32 %v3048_v60, %v3047_v7  ;;  %3086 = vmatprep.subr.bf16.mxu1 %v2075_v24 }
 0x28d   :  { %3087 = vmatpush3.bf16.msra.mxu1 %v4513_v2 }
 0x28e   :  { %v1984_v11 = vadd.f32 %v3049_v44, %v1823_v50  ;;  %v2053_v14 = vmax.f32 %v1981_v45, 0.0 }
 0x290   :  { %v2054_v33 = vmax.f32 %v1984_v11, 0.0  ;;  %v3050_v57 = vpop.f32.mrb[104].mxu0 }
 0x291   :  { %v3051_v25 = vpop.f32.mrb[105].mxu0 }
 0x292   :  { %v3052_v18 = vadd.f32 %v3051_v25, %v3050_v57  ;;  %v3053_v27 = vpop.f32.mrb[106].mxu0  ;;  %v2076_v63 = vpack.c.bf16 %v2054_v33, %v2053_v14 }
 0x293   :  { %v3054_v30 = vpop.f32.mrb[107].mxu0 }
 0x294   :  { %v1989_v3 = vadd.f32 %v3052_v18, %v1828_v23  ;;  %v3055_v1 = vadd.f32 %v3054_v30, %v3053_v27  ;;  %3088 = vmatprep.subr.bf16.mxu1 %v2076_v63 }
 0x295   :  { %3089 = vmatpush3.bf16.msra.mxu1 %v4527_v0 }
 0x296   :  { %v1992_v2 = vadd.f32 %v3055_v1, %v1831_v17  ;;  %v2055_v49 = vmax.f32 %v1989_v3, 0.0 }
 0x298   :  { %v2056_v61 = vmax.f32 %v1992_v2, 0.0  ;;  %v3056_v55 = vpop.f32.mrb[108].mxu0 }
 0x299   :  { %v3057_v37 = vpop.f32.mrb[109].mxu0 }
 0x29a   :  { %v3058_v22 = vadd.f32 %v3057_v37, %v3056_v55  ;;  %v3059_v21 = vpop.f32.mrb[110].mxu0  ;;  %v2077_v29 = vpack.c.bf16 %v2056_v61, %v2055_v49 }
 0x29b   :  { %v3060_v32 = vpop.f32.mrb[111].mxu0 }
 0x29c   :  { %v1997_v19 = vadd.f32 %v3058_v22, %v1836_v46  ;;  %v3061_v56 = vadd.f32 %v3060_v32, %v3059_v21  ;;  %3090 = vmatprep.subr.bf16.mxu1 %v2077_v29 }
 0x29d   :  { %3091 = vmatpush3.bf16.msra.mxu1 %v4537_v31 }
 0x29e   :  { %v2000_v0 = vadd.f32 %v3061_v56, %v1839_v13  ;;  %v2057_v51 = vmax.f32 %v1997_v19, 0.0  ;;  %v3406_v19 = vld [vmem:[%s4711_s5 + $0x30] ss:$8 sps:$4 sm:$0xff]   ;;  %v3407_v56 = vld [vmem:[%s4711_s5 + $0x44] ss:$8 sps:$4 sm:$0xff]  }
 0x2a0   :  { %v2058_v58 = vmax.f32 %v2000_v0, 0.0  ;;  %v3062_v5 = vpop.f32.mrb[112].mxu0  ;;  %v3409_v0 = vld [vmem:[%s4711_s5 + $0x40] ss:$8 sps:$4 sm:$0xff]  }
 0x2a1   :  { %v3063_v62 = vpop.f32.mrb[113].mxu0 }
 0x2a2   :  { %v3064_v4 = vadd.f32 %v3063_v62, %v3062_v5  ;;  %v3065_v9 = vpop.f32.mrb[114].mxu0  ;;  %v2078_v7 = vpack.c.bf16 %v2058_v58, %v2057_v51  ;;  %v3410_v51 = vld [vmem:[%s4711_s5 + $0x54] ss:$8 sps:$4 sm:$0xff]   ;;  %v3412_v58 = vld [vmem:[%s4711_s5 + $0x50] ss:$8 sps:$4 sm:$0xff]  }
 0x2a3   :  { %v3066_v24 = vpop.f32.mrb[115].mxu0  ;;  %v3413_v5 = vld [vmem:[%s4711_s5 + $0x64] ss:$8 sps:$4 sm:$0xff]   ;;  %v3415_v62 = vld [vmem:[%s4711_s5 + $0x60] ss:$8 sps:$4 sm:$0xff]  }
 0x2a4   :  { %v2005_v12 = vadd.f32 %v3064_v4, %v1844_v35  ;;  %v3067_v60 = vadd.f32 %v3066_v24, %v3065_v9  ;;  %3092 = vmatprep.subr.bf16.mxu1 %v2078_v7  ;;  %v3416_v35 = vld [vmem:[%s4711_s5 + $0x74] ss:$8 sps:$4 sm:$0xff]   ;;  %v3418_v4 = vld [vmem:[%s4711_s5 + $0x70] ss:$8 sps:$4 sm:$0xff]   ;;  %v3419_v9 = vld [vmem:[%s4713_s7] sm:$0xff]  }
 0x2a5   :  { %3093 = vmatpush3.bf16.msra.mxu1 %v4551_v6 }
 0x2a6   :  { %v2008_v31 = vadd.f32 %v3067_v60, %v1847_v54  ;;  %v2059_v50 = vmax.f32 %v2005_v12, 0.0  ;;  %v2118_v60 = vpop.permute.xlu0 %2117 }
 0x2a8   :  { %v2060_v45 = vmax.f32 %v2008_v31, 0.0  ;;  %v3068_v44 = vpop.f32.mrb[116].mxu0 }
 0x2a9   :  { %v3069_v11 = vpop.f32.mrb[117].mxu0 }
 0x2aa   :  { %v3070_v36 = vadd.f32 %v3069_v11, %v3068_v44  ;;  %v3071_v14 = vpop.f32.mrb[118].mxu0  ;;  %v2079_v33 = vpack.c.bf16 %v2060_v45, %v2059_v50  ;;  %v2123_v44 = vpop.permute.xlu1 %2122 }
 0x2ab   :  { %v3072_v57 = vpop.f32.mrb[119].mxu0 }
 0x2ac   :  { %v2013_v38 = vadd.f32 %v3070_v36, %v1852_v43  ;;  %v3073_v25 = vadd.f32 %v3072_v57, %v3071_v14  ;;  %3094 = vmatprep.subr.bf16.mxu1 %v2079_v33 }
 0x2ad   :  { %3095 = vmatpush3.bf16.msra.mxu1 %v4560_v59 }
 0x2ae   :  { %v2016_v6 = vadd.f32 %v3073_v25, %v1855_v40  ;;  %v2061_v23 = vmax.f32 %v2013_v38, 0.0  ;;  %v2128_v25 = vpop.permute.xlu0 %2127 }
 0x2b0   :  { %v2062_v18 = vmax.f32 %v2016_v6, 0.0  ;;  %v3074_v27 = vpop.f32.mrb[120].mxu0 }
 0x2b1   :  { %v3075_v63 = vpop.f32.mrb[121].mxu0 }
 0x2b2   :  { %v3076_v39 = vadd.f32 %v3075_v63, %v3074_v27  ;;  %v3077_v30 = vpop.f32.mrb[122].mxu0  ;;  %v2080_v17 = vpack.c.bf16 %v2062_v18, %v2061_v23  ;;  %v2133_v27 = vpop.permute.xlu1 %2132 }
 0x2b3   :  { %v3078_v3 = vpop.f32.mrb[123].mxu0 }
 0x2b4   :  { %v2021_v16 = vadd.f32 %v3076_v39, %v1860_v52  ;;  %v3079_v1 = vadd.f32 %v3078_v3, %v3077_v30  ;;  %3096 = vmatprep.subr.bf16.mxu1 %v2080_v17 }
 0x2b5   :  { %3097 = vmatpush3.bf16.msra.mxu1 %v4572_v26 }
 0x2b6   :  { %v2024_v59 = vadd.f32 %v3079_v1, %v1863_v8  ;;  %v2063_v2 = vmax.f32 %v2021_v16, 0.0  ;;  %v2138_v1 = vpop.permute.xlu0 %2137 }
 0x2b8   :  { %v2064_v49 = vmax.f32 %v2024_v59, 0.0  ;;  %v3080_v61 = vpop.f32.mrb[124].mxu0 }
 0x2b9   :  { %v3081_v55 = vpop.f32.mrb[125].mxu0 }
 0x2ba   :  { %v3082_v34 = vadd.f32 %v3081_v55, %v3080_v61  ;;  %v3083_v37 = vpop.f32.mrb[126].mxu0  ;;  %v2081_v46 = vpack.c.bf16 %v2064_v49, %v2063_v2  ;;  %v2143_v61 = vpop.permute.xlu1 %2142 }
 0x2bb   :  { %v3084_v22 = vpop.f32.mrb[127].mxu0 }
 0x2bc   :  { %v2029_v53 = vadd.f32 %v3082_v34, %v1868_v20  ;;  %v3085_v21 = vadd.f32 %v3084_v22, %v3083_v37  ;;  %3098 = vmatprep.subr.bf16.mxu1 %v2081_v46 }
 0x2bd   :  { %3099 = vmatpush3.bf16.msra.mxu1 %v4580_v41  ;;  %v3400_v41 = vld [vmem:[%s4711_s5 + $0x10] ss:$8 sps:$4 sm:$0xff]  }
 0x2be   :  { %v2032_v26 = vadd.f32 %v3085_v21, %v1871_v47  ;;  %v2065_v29 = vmax.f32 %v2029_v53, 0.0  ;;  %v2148_v21 = vpop.permute.xlu0 %2147 }
 0x2c0   :  { %v2066_v32 = vmax.f32 %v2032_v26, 0.0 }
 0x2c2   :  { %v2082_v13 = vpack.c.bf16 %v2066_v32, %v2065_v29 }
 0x2c4   :  { %3100 = vmatprep.subr.bf16.mxu1 %v2082_v13  ;;  %v2153_v13 = vpop.permute.xlu1 %2152 }
 0x2c5   :  { %3101 = vmatpush3.bf16.msra.mxu1 %v4589_v48  ;;  %v3404_v48 = vld [vmem:[%s4711_s5 + $0x34] ss:$8 sps:$4 sm:$0xff]  }
 0x2c8   :  { %2308 = vmatmul.mubr.bf16.vlgmr.msra.gmra.mrb[64].mxu1 %v3395_v42 }
 0x2c9   :  { %2315 = vmatprep.mubr.bf16.mxu1 %v3398_v28 }
 0x2d0   :  { %2316 = vmatmul.mubr.bf16.gmra.mrb[68].mxu1 %v3400_v41 }
 0x2d1   :  { %2323 = vmatprep.mubr.bf16.mxu1 %v3401_v15 }
 0x2d8   :  { %2324 = vmatmul.mubr.bf16.gmra.mrb[72].mxu1 %v3403_v10 }
 0x2d9   :  { %2331 = vmatprep.mubr.bf16.mxu1 %v3404_v48 }
 0x2e0   :  { %2332 = vmatmul.mubr.bf16.gmra.mrb[76].mxu1 %v3406_v19 }
 0x2e1   :  { %2339 = vmatprep.mubr.bf16.mxu1 %v3407_v56 }
 0x2e8   :  { %2340 = vmatmul.mubr.bf16.gmra.mrb[80].mxu1 %v3409_v0  ;;  %v2158_v0 = vpop.permute.xlu0 %2157 }
 0x2e9   :  { %2347 = vmatprep.mubr.bf16.mxu1 %v3410_v51 }
 0x2f0   :  { %2348 = vmatmul.mubr.bf16.gmra.mrb[84].mxu1 %v3412_v58 }
 0x2f1   :  { %2355 = vmatprep.mubr.bf16.mxu1 %v3413_v5 }
 0x2f8   :  { %2356 = vmatmul.mubr.bf16.gmra.mrb[88].mxu1 %v3415_v62  ;;  %v2163_v62 = vpop.permute.xlu1 %2162 }
 0x2f9   :  { %2363 = vmatprep.mubr.bf16.mxu1 %v3416_v35 }
 0x300   :  { %2364 = vmatmul.mubr.bf16.gmra.mrb[92].mxu1 %v3418_v4 }
 0x301   :  { %3244 = vmatprep.mubr.bf16.mxu1 %v3419_v9 }
 0x39b   :  { %v3102_v7 = vpop.f32.mrb[64].mxu1 }
 0x39c   :  { %v3103_v24 = vpop.f32.mrb[65].mxu1 }
 0x39d   :  { %v3104_v54 = vadd.f32 %v3103_v24, %v3102_v7  ;;  %v3105_v12 = vpop.f32.mrb[66].mxu1 }
 0x39e   :  { %v3106_v31 = vpop.f32.mrb[67].mxu1 }
 0x39f   :  { %v2310_v50 = vadd.f32 %v3104_v54, %v2118_v60  ;;  %v3107_v45 = vadd.f32 %v3106_v31, %v3105_v12  ;;  %v2168_v31 = vpop.permute.xlu0 %2167 }
 0x3a1   :  { %v2313_v11 = vadd.f32 %v3107_v45, %v2123_v44  ;;  %v2372_v43 = vmax.f32 %v2310_v50, 0.0 }
 0x3a3   :  { %v2373_v36 = vmax.f32 %v2313_v11, 0.0  ;;  %v3108_v14 = vpop.f32.mrb[68].mxu1  ;;  %v2173_v11 = vpop.permute.xlu1 %2172 }
 0x3a4   :  { %v3109_v33 = vpop.f32.mrb[69].mxu1 }
 0x3a5   :  { %v3110_v57 = vadd.f32 %v3109_v33, %v3108_v14  ;;  %v3111_v40 = vpop.f32.mrb[70].mxu1  ;;  %v2388_v38 = vpack.c.bf16 %v2373_v36, %v2372_v43 }
 0x3a6   :  { %v3112_v6 = vpop.f32.mrb[71].mxu1 }
 0x3a7   :  { %v2318_v23 = vadd.f32 %v3110_v57, %v2128_v25  ;;  %v3113_v18 = vadd.f32 %v3112_v6, %v3111_v40  ;;  %3228 = vmatprep.subr.bf16.mxu1 %v2388_v38  ;;  %v2178_v6 = vpop.permute.xlu0 %2177 }
 0x3a8   :  { %3229 = vmatpush3.bf16.msra.mxu1 %v2388_v38 }
 0x3a9   :  { %v2321_v63 = vadd.f32 %v3113_v18, %v2133_v27  ;;  %v2374_v52 = vmax.f32 %v2318_v23, 0.0 }
 0x3ab   :  { %v2375_v39 = vmax.f32 %v2321_v63, 0.0  ;;  %v3114_v30 = vpop.f32.mrb[72].mxu1  ;;  %v2183_v63 = vpop.permute.xlu1 %2182 }
 0x3ac   :  { %v3115_v17 = vpop.f32.mrb[73].mxu1 }
 0x3ad   :  { %v3116_v3 = vadd.f32 %v3115_v17, %v3114_v30  ;;  %v3117_v8 = vpop.f32.mrb[74].mxu1  ;;  %v2389_v16 = vpack.c.bf16 %v2375_v39, %v2374_v52 }
 0x3ae   :  { %v3118_v59 = vpop.f32.mrb[75].mxu1 }
 0x3af   :  { %v2326_v2 = vadd.f32 %v3116_v3, %v2138_v1  ;;  %v3119_v49 = vadd.f32 %v3118_v59, %v3117_v8  ;;  %3230 = vmatprep.subr.bf16.mxu1 %v2389_v16  ;;  %v2188_v59 = vpop.permute.xlu0 %2187 }
 0x3b0   :  { %3231 = vmatpush3.bf16.msra.mxu1 %v2389_v16 }
 0x3b1   :  { %v2329_v55 = vadd.f32 %v3119_v49, %v2143_v61  ;;  %v2376_v20 = vmax.f32 %v2326_v2, 0.0 }
 0x3b3   :  { %v2377_v34 = vmax.f32 %v2329_v55, 0.0  ;;  %v3120_v37 = vpop.f32.mrb[76].mxu1  ;;  %v2193_v55 = vpop.permute.xlu1 %2192 }
 0x3b4   :  { %v3121_v46 = vpop.f32.mrb[77].mxu1 }
 0x3b5   :  { %v3122_v22 = vadd.f32 %v3121_v46, %v3120_v37  ;;  %v3123_v47 = vpop.f32.mrb[78].mxu1  ;;  %v2390_v53 = vpack.c.bf16 %v2377_v34, %v2376_v20 }
 0x3b6   :  { %v3124_v26 = vpop.f32.mrb[79].mxu1 }
 0x3b7   :  { %v2334_v29 = vadd.f32 %v3122_v22, %v2148_v21  ;;  %v3125_v32 = vadd.f32 %v3124_v26, %v3123_v47  ;;  %3232 = vmatprep.subr.bf16.mxu1 %v2390_v53  ;;  %v3420_v22 = vld [vmem:[%s4713_s7 + $0x8] sm:$0xff]   ;;  %v3421_v47 = vld [vmem:[%s4713_s7 + $0x10] sm:$0xff]   ;;  %v2415_v21 = vpop.permute.xlu0 %2414  ;;  %v2420_v26 = vpop.permute.xlu1 %2419 }
 0x3b8   :  { %3233 = vmatpush3.bf16.msra.mxu1 %v2390_v53  ;;  %v3422_v53 = vld [vmem:[%s4713_s7 + $0x18] sm:$0xff]   ;;  %s3448_s7 = smov [#allocation3]  }
 0x3b9   :  { %v2337_v42 = vadd.f32 %v3125_v32, %v2153_v13  ;;  %v2378_v28 = vmax.f32 %v2334_v29, 0.0  ;;  %s2654_s2 = sshll.u32 %s3448_s7, 4  ;;  %s2655_s2 = int_to_ptr.vmem [resolvable:$true] %s2654_s2 }
 0x3ba   :  { %s3423_s8 = scalar_lea.vmem %s2655_s2, 16  ;;  %s3427_s9 = scalar_lea.vmem %s2655_s2, 32 }
 0x3bb   :  { %v2379_v41 = vmax.f32 %v2337_v42, 0.0  ;;  %v3126_v15 = vpop.f32.mrb[80].mxu1  ;;  %v2425_v29 = vpop.permute.xlu0 %2424  ;;  %p3424_p0 = scmp.ne.s32.totalorder %s2655_s2, %s3423_s8  ;;  %p3428_p1 = scmp.lt.s32.totalorder %s2655_s2, %s2655_s2 }
 0x3bc   :  { %v3127_v10 = vpop.f32.mrb[81].mxu1  ;;  %v2430_v32 = vpop.permute.xlu1 %2429  ;;  %p3429_p2 = scmp.lt.s32.totalorder %s3427_s9, %s3423_s8 }
 0x3bd   :  { %v3128_v48 = vadd.f32 %v3127_v10, %v3126_v15  ;;  %v3129_v19 = vpop.f32.mrb[82].mxu1  ;;  %v2391_v56 = vpack.c.bf16 %v2379_v41, %v2378_v28 }
 0x3be   :  { %v3130_v51 = vpop.f32.mrb[83].mxu1  ;;  %p3430_p3 = por %p3429_p2, %p3428_p1 }
 0x3bf   :  { %v2342_v58 = vadd.f32 %v3128_v48, %v2158_v0  ;;  %v3131_v5 = vadd.f32 %v3130_v51, %v3129_v19  ;;  %3234 = vmatprep.subr.bf16.mxu1 %v2391_v56  ;;  %v3259_v13 = vpop.permute.xlu0 %3258 }
 0x3c0   :  { %3235 = vmatpush3.bf16.msra.mxu1 %v2391_v56  ;;  %v2435_v42 = vpop.permute.xlu1 %2434  ;;  %p3431_p4 = pnand %p3430_p3, %p3424_p0 }
 0x3c1   :  { %v2345_v35 = vadd.f32 %v3131_v5, %v2163_v62  ;;  %v2380_v4 = vmax.f32 %v2342_v58, 0.0  ;;  %v3260_v5 = vunpack.i.l.bf16 %v3259_v13 }
 0x3c3   :  { %v2381_v9 = vmax.f32 %v2345_v35, 0.0  ;;  %v3132_v7 = vpop.f32.mrb[84].mxu1  ;;  %v3264_v28 = vpop.permute.xlu0 %3263 }
 0x3c4   :  { %v3133_v24 = vpop.f32.mrb[85].mxu1  ;;  %v2440_v41 = vpop.permute.xlu1 %2439 }
 0x3c5   :  { %v3134_v54 = vadd.f32 %v3133_v24, %v3132_v7  ;;  %v3135_v12 = vpop.f32.mrb[86].mxu1  ;;  %v2392_v60 = vpack.c.bf16 %v2381_v9, %v2380_v4  ;;  %v3261_v9 = vunpack.i.h.bf16 %v3259_v13  ;;  %v3265_v24 = vunpack.i.l.bf16 %v3264_v28 }
 0x3c6   :  { %v3136_v50 = vpop.f32.mrb[87].mxu1 }
 0x3c7   :  { %v2350_v45 = vadd.f32 %v3134_v54, %v2168_v31  ;;  %v3137_v44 = vadd.f32 %v3136_v50, %v3135_v12  ;;  %3236 = vmatprep.subr.bf16.mxu1 %v2392_v60  ;;  %v2445_v0 = vpop.permute.xlu0 %2444  ;;  %v3266_v31 = vunpack.i.h.bf16 %v3264_v28 }
 0x3c8   :  { %3237 = vmatpush3.bf16.msra.mxu1 %v2392_v60  ;;  %v2588_v7 = vpop.permute.xlu1 %2587 }
 0x3c9   :  { %v2353_v43 = vadd.f32 %v3137_v44, %v2173_v11  ;;  %v2382_v36 = vmax.f32 %v2350_v45, 0.0 }
 0x3cb   :  { %v2383_v14 = vmax.f32 %v2353_v43, 0.0  ;;  %v3138_v33 = vpop.f32.mrb[88].mxu1  ;;  %v2450_v11 = vpop.permute.xlu0 %2449 }
 0x3cc   :  { %v3139_v57 = vpop.f32.mrb[89].mxu1 }
 0x3cd   :  { %v3140_v40 = vadd.f32 %v3139_v57, %v3138_v33  ;;  %v3141_v38 = vpop.f32.mrb[90].mxu1  ;;  %v2393_v25 = vpack.c.bf16 %v2383_v14, %v2382_v36 }
 0x3ce   :  { %v3142_v23 = vpop.f32.mrb[91].mxu1 }
 0x3cf   :  { %v2358_v18 = vadd.f32 %v3140_v40, %v2178_v6  ;;  %v3143_v27 = vadd.f32 %v3142_v23, %v3141_v38  ;;  %3238 = vmatprep.subr.bf16.mxu1 %v2393_v25 }
 0x3d0   :  { %3239 = vmatpush3.bf16.msra.mxu1 %v2393_v25  ;;  %v2593_v25 = vpop.permute.xlu1 %2592 }
 0x3d1   :  { %v2361_v52 = vadd.f32 %v3143_v27, %v2183_v63  ;;  %v2384_v39 = vmax.f32 %v2358_v18, 0.0 }
 0x3d3   :  { %v2385_v30 = vmax.f32 %v2361_v52, 0.0  ;;  %v3144_v17 = vpop.f32.mrb[92].mxu1 }
 0x3d4   :  { %v3145_v3 = vpop.f32.mrb[93].mxu1 }
 0x3d5   :  { %v3146_v8 = vadd.f32 %v3145_v3, %v3144_v17  ;;  %v3147_v16 = vpop.f32.mrb[94].mxu1  ;;  %v2394_v1 = vpack.c.bf16 %v2385_v30, %v2384_v39 }
 0x3d6   :  { %v3148_v2 = vpop.f32.mrb[95].mxu1 }
 0x3d7   :  { %v2366_v49 = vadd.f32 %v3146_v8, %v2188_v59  ;;  %v3149_v61 = vadd.f32 %v3148_v2, %v3147_v16  ;;  %3240 = vmatprep.subr.bf16.mxu1 %v2394_v1 }
 0x3d8   :  { %3241 = vmatpush3.bf16.msra.mxu1 %v2394_v1  ;;  %v2598_v1 = vpop.permute.xlu0 %2597 }
 0x3d9   :  { %v2369_v20 = vadd.f32 %v3149_v61, %v2193_v55  ;;  %v2386_v34 = vmax.f32 %v2366_v49, 0.0  ;;  %v2603_v55 = vpop.permute.xlu1 %2602 }
 0x3db   :  { %v2387_v37 = vmax.f32 %v2369_v20, 0.0 }
 0x3dd   :  { %v2395_v46 = vpack.c.bf16 %v2387_v37, %v2386_v34 }
 0x3df   :  { %3242 = vmatprep.subr.bf16.mxu1 %v2395_v46 }
 0x3e0   :  { %3243 = vmatpush3.bf16.msra.mxu1 %v2395_v46 }
 0x3e3   :  { %3245 = vmatmul.mubr.bf16.vlgmr.msra.gmra.mrb[96].mxu1 %v3420_v22 }
 0x3e4   :  { %3248 = vmatprep.mubr.bf16.mxu1 %v3421_v47 }
 0x3eb   :  { %3249 = vmatmul.mubr.bf16.gmra.mrb[100].mxu1 %v3422_v53 }
 0x4b6   :  { %v3246_v15 = vpop.f32.mrb[96].mxu1 }
 0x4b7   :  { %v2519_v10 = vadd.f32 %v3246_v15, %v2425_v29  ;;  %v2510_v48 = vpop.f32.mrb[97].mxu1  ;;  %v2639_v15 = vpop.permute.xlu0 %2638 }
 0x4b8   :  { %v2511_v19 = vadd.f32 %v2510_v48, %v2415_v21  ;;  %v3247_v56 = vpop.f32.mrb[98].mxu1  ;;  %v2641_v21 = vlaneseq }
 0x4b9   :  { %v2522_v51 = vadd.f32 %v3247_v56, %v2430_v32  ;;  %v2513_v58 = vpop.f32.mrb[99].mxu1  ;;  %v2543_v62 = vmax.f32 %v2519_v10, 0.0 }
 0x4ba   :  { %v2541_v35 = vmax.f32 %v2511_v19, 0.0  ;;  %v2514_v4 = vadd.f32 %v2513_v58, %v2420_v26  ;;  %v2642_v32 = vshrl.u32 %v2641_v21, 7 }
 0x4bb   :  { %v2544_v12 = vmax.f32 %v2522_v51, 0.0  ;;  %v2607_v50 = vmul.f32 %v3265_v24, %v2543_v62 }
 0x4bc   :  { %v2605_v54 = vmul.f32 %v3260_v5, %v2541_v35  ;;  %v2542_v60 = vmax.f32 %v2514_v4, 0.0  ;;  %v2643_v28 = vsub.s32 0, %v2642_v32 }
 0x4bd   :  { %v2608_v33 = vmul.f32 %v3266_v31, %v2544_v12  ;;  %v2617_v27 = vsel %vm2613_vm1, %v2607_v50, 0.0 }
 0x4be   :  { %v2606_v45 = vmul.f32 %v3261_v9, %v2542_v60  ;;  %v3250_v44 = vpop.f32.mrb[100].mxu1  ;;  %v2614_v14 = vsel %vm2613_vm1, %v2605_v54, 0.0  ;;  %v2644_v48 = vrot.slane %v2639_v15, %v2643_v28 }
 0x4bf   :  { %v2535_v43 = vadd.f32 %v3250_v44, %v2445_v0  ;;  %v2526_v36 = vpop.f32.mrb[101].mxu1  ;;  %v2619_v17 = vsel %vm2613_vm1, %v2608_v33, 0.0 }
 0x4c0   :  { %v2615_v57 = vsel %vm2613_vm1, %v2606_v45, 0.0  ;;  %v2527_v40 = vadd.f32 %v2526_v36, %v2435_v42  ;;  %v3251_v38 = vpop.f32.mrb[102].mxu1 }
 0x4c1   :  { %v2616_v6 = vadd.f32 %v2615_v57, %v2614_v14  ;;  %v2538_v23 = vadd.f32 %v3251_v38, %v2450_v11  ;;  %v2529_v18 = vpop.f32.mrb[103].mxu1  ;;  %v2547_v63 = vmax.f32 %v2535_v43, 0.0 }
 0x4c2   :  { %v2545_v52 = vmax.f32 %v2527_v40, 0.0  ;;  %v2530_v39 = vadd.f32 %v2529_v18, %v2440_v41 }
 0x4c3   :  { %v2618_v30 = vadd.f32 %v2617_v27, %v2616_v6  ;;  %v2548_v8 = vmax.f32 %v2538_v23, 0.0  ;;  %v2611_v2 = vmul.f32 %v2598_v1, %v2547_v63 }
 0x4c4   :  { %v2609_v3 = vmul.f32 %v2588_v7, %v2545_v52  ;;  %v2546_v16 = vmax.f32 %v2530_v39, 0.0 }
 0x4c5   :  { %v2620_v59 = vadd.f32 %v2619_v17, %v2618_v30  ;;  %v2612_v34 = vmul.f32 %v2603_v55, %v2548_v8  ;;  %v2625_v22 = vsel %vm2613_vm1, %v2611_v2, 0.0 }
 0x4c6   :  { %v2621_v49 = vsel %vm2613_vm1, %v2609_v3, 0.0  ;;  %v2610_v61 = vmul.f32 %v2593_v25, %v2546_v16 }
 0x4c7   :  { %v2622_v20 = vadd.f32 %v2621_v49, %v2620_v59  ;;  %v2627_v53 = vsel %vm2613_vm1, %v2612_v34, 0.0 }
 0x4c8   :  { %v2623_v37 = vsel %vm2613_vm1, %v2610_v61, 0.0 }
 0x4c9   :  { %v2624_v46 = vadd.f32 %v2623_v37, %v2622_v20 }
 0x4cb   :  { %v2626_v47 = vadd.f32 %v2625_v22, %v2624_v46 }
 0x4cd   :  { %v2628_v26 = vadd.f32 %v2627_v53, %v2626_v47 }
 0x4cf   :  { %v2629_v29 = vrot.slane %v2628_v26, 4 }
 0x4d1   :  { %v2630_v13 = vadd.f32 %v2629_v29, %v2628_v26 }
 0x4d3   :  { %v2631_v42 = vrot.slane %v2630_v13, 2 }
 0x4d5   :  { %v2632_v41 = vadd.f32 %v2631_v42, %v2630_v13 }
 0x4d7   :  { %v2633_v10 = vrot.slane %v2632_v41, 1 }
 0x4d9   :  { %v2634_v19 = vadd.f32 %v2633_v10, %v2632_v41 }
 0x4db   :  { %v2645_v56 = vadd.f32 %v2644_v48, %v2634_v19 }
 0x4dd   :  { %2647 = vst.msk [vmem:[#allocation3] sm:$0x1] %vm2646_vm2, %v2645_v56 }
 0x4de   :  { %3434 = shalt.err (!%p3431_p4)
}
 0x4df   :  { %s3435_s28 = scalar_lea.hbm %s4717_s11, 16 }
 0x4e0   :  { %p3436_p5 = scmp.ne.s32.totalorder %s4717_s11, %s3435_s28  ;;  %p3439_p6 = scmp.lt.u32.totalorder %s3435_s28, %s4717_s11 }
 0x4e2   :  { %p3441_p7 = pnand %p3439_p6, %p3436_p5 }
 0x4e4   :  { %3444 = shalt.err (!%p3441_p7)
}
 0x4e5   :  { %2657 = dma.vmem_to_hbm [thread:$0]  %s2655_s2, 16, %s4717_s11, [#allocation4]  }
 0x4e6   :  { %3445 = dma.done.wait [#allocation4], 16  }
 0x4e7   :  { %3446 = vsyncadd [#allocation4], 4294967280 }
 0x4e8   :  { %2661 = vsyncpa [#allocation4], 1 }

</bundles_post_ra>
